<compile_context>
chip_gen: v7x
topology: tpu7x:2x2x1
jax: 0.10.0
libtpu: 0.0.40
codegen_flags: <defaults>
</compile_context>

<pallas_src>
import functools
import math

import jax
import jax.numpy as jnp
from jax.experimental import pallas as pl
from jax.experimental.pallas import tpu as pltpu


def _round_up(x, m):
    return ((x + m - 1) // m) * m


def _default_block_b():
    """128 fills the v5e MXU M dim; 256 fills v6e/v7x."""
    try:
        kind = jax.devices()[0].device_kind.lower()
    except Exception:
        return 128
    if "v6" in kind or "v7" in kind:
        return 256
    return 128


def _layer_norm(v, g, b, eps=1e-5):
    mean = jnp.mean(v, axis=-1, keepdims=True)
    var = jnp.mean((v - mean) ** 2, axis=-1, keepdims=True)
    return (v - mean) * jax.lax.rsqrt(var + eps) * g + b


def _bilstm_kernel(num_layers, hidden_dim, seq_len, input_dim, gstride, *refs):
    # refs: x (TB, T*D) bf16, ln1_g, ln1_b,
    #       [per layer: w_packed (in, 3*gstride) bf16, b_packed (1, 3*gstride) f32],
    #       ln2_g, ln2_b, fc_w (2H, Opad) bf16, fc_b (1, Opad) f32, out_ref (TB, Opad)
    H = hidden_dim
    T = seq_len
    D = input_dim
    gsz = 2 * H                                        # one gate, both directions fused

    it = iter(refs)
    x_ref = next(it)
    ln1_g = next(it)
    ln1_b = next(it)
    lstm_refs = [(next(it), next(it)) for _ in range(num_layers)]
    ln2_g = next(it)
    ln2_b = next(it)
    fc_w = next(it)
    fc_b = next(it)
    out_ref = next(it)

    # --- DotProductAttention, last query only, on the VPU/XLU --------------------
    # x arrives lane-dense as (TB, T*D); time step t is the static lane slice
    # [t*D, (t+1)*D).  All math in f32 (safe on v5e's f32-only VPU/EUP).
    xf = x_ref[...].astype(jnp.float32)                # (TB, T*D)
    q = xf[:, (T - 1) * D:T * D]                       # (TB, D) == x[:, -1, :]

    score_cols = []
    for t in range(T):                                 # short unrolled FMA loop over T
        x_t = xf[:, t * D:(t + 1) * D]
        score_cols.append(jnp.sum(q * x_t, axis=-1, keepdims=True))   # (TB, 1)
    s = jnp.concatenate(score_cols, axis=-1)           # (TB, T)  (unscaled, as in the ref)

    m = jnp.max(s, axis=-1, keepdims=True)
    e = jnp.exp(s - m)
    inv = pl.reciprocal(jnp.sum(e, axis=-1, keepdims=True), approx=True)  # EUP slot
    attn = e * inv                                     # (TB, T) softmax over keys

    ctx = jnp.zeros(q.shape, jnp.float32)              # (TB, D)
    for t in range(T):
        ctx = ctx + attn[:, t:t + 1] * xf[:, t * D:(t + 1) * D]

    # --- LayerNorm over input_dim -------------------------------------------------
    h_in = _layer_norm(ctx, ln1_g[...], ln1_b[...])    # (TB, D) f32

    # --- Bidirectional multi-layer LSTM over a length-1 sequence -------------------
    # Both directions fused into one matmul; only i/g/o gates packed (forget gate
    # multiplies c0 == 0 and is dead).  Gate groups are 128-lane aligned at stride
    # `gstride`, so h = [h_fwd | h_bwd] falls out of aligned static slices.
    for layer in range(num_layers):
        w_ref, b_ref = lstm_refs[layer]
        gates = jnp.dot(h_in.astype(jnp.bfloat16), w_ref[...],
                        preferred_element_type=jnp.float32) + b_ref[...]  # (TB, 3*gstride)
        i_g = jax.nn.sigmoid(gates[:, 0:gsz])
        g_g = jnp.tanh(gates[:, gstride:gstride + gsz])
        o_g = jax.nn.sigmoid(gates[:, 2 * gstride:2 * gstride + gsz])
        h_in = o_g * jnp.tanh(i_g * g_g)               # (TB, 2H) = [h_fwd | h_bwd]
        # TODO(synk): multi-step sequences would need the real recurrence; this
        # forget-gate / b_hh elision is only valid for seq_len == 1 with h0 = c0 = 0.

    # --- LayerNorm over 2H, (eval) dropout = identity, lane-dense fc ---------------
    # TODO(synk): dropout is identity at inference; training-mode dropout not implemented.
    h = _layer_norm(h_in, ln2_g[...], ln2_b[...])      # (TB, 2H) f32
    out = jnp.dot(h.astype(jnp.bfloat16), fc_w[...],
                  preferred_element_type=jnp.float32) + fc_b[...]          # (TB, Opad)
    out_ref[...] = out.astype(out_ref.dtype)


def bilstm_classifier_forward(x, params, *, num_layers, hidden_dim, output_dim,
                              block_b=None):
    """x: (B, T, D) float32. Returns (B, output_dim) float32."""
    B, T, D = x.shape
    H = hidden_dim
    gstride = params["lstm"][0]["w_packed"].shape[1] // 3
    O_pad = params["fc_w_T"].shape[1]                  # lane-padded output width

    if block_b is None:
        block_b = _default_block_b()

    # Batch tiling: multiples of 16 sublanes (bf16-safe); keep >= 2 grid steps when
    # the batch allows so both v7x TensorCores get tiles under ("parallel",).
    TB = min(block_b, _round_up(B, 16))
    B_pad = _round_up(B, TB)
    if B_pad // TB < 2 and B_pad >= 32:
        TB = _round_up(B_pad // 2, 16)
        B_pad = _round_up(B, TB)
    grid = (B_pad // TB,)

    # Lane-dense, bf16 input slab: (B_pad, T*D).
    x_flat = x.reshape(B, T * D).astype(jnp.bfloat16)
    if B_pad != B:
        x_flat = jnp.pad(x_flat, ((0, B_pad - B), (0, 0)))

    inputs = [x_flat, params["ln1_g"], params["ln1_b"]]
    in_specs = [
        pl.BlockSpec((TB, T * D), lambda i: (i, 0)),
        pl.BlockSpec((1, D), lambda i: (0, 0)),
        pl.BlockSpec((1, D), lambda i: (0, 0)),
    ]
    for layer in range(num_layers):
        w = params["lstm"][layer]["w_packed"]          # (in_dim, 3*gstride) bf16
        b = params["lstm"][layer]["b_packed"]          # (1, 3*gstride) f32
        inputs += [w, b]
        in_specs += [
            pl.BlockSpec(tuple(w.shape), lambda i: (0, 0)),
            pl.BlockSpec(tuple(b.shape), lambda i: (0, 0)),
        ]
    inputs += [params["ln2_g"], params["ln2_b"], params["fc_w_T"], params["fc_b"]]
    in_specs += [
        pl.BlockSpec((1, 2 * H), lambda i: (0, 0)),
        pl.BlockSpec((1, 2 * H), lambda i: (0, 0)),
        pl.BlockSpec((2 * H, O_pad), lambda i: (0, 0)),
        pl.BlockSpec((1, O_pad), lambda i: (0, 0)),
    ]

    # Explicit VMEM budget: double-buffered x tile + (conservatively) 2x weights + out.
    x_tile_bytes = TB * T * D * 2
    weight_bytes = sum(int(a.size) * a.dtype.itemsize for a in inputs[1:])
    out_tile_bytes = TB * O_pad * 4
    need = 2 * (x_tile_bytes + weight_bytes + out_tile_bytes)
    vmem_limit = int(min(max(2 * need, 16 << 20), 32 << 20))   # <= scoped default on v6e/v7x

    # Advisory cost estimate for XLA's scheduler.
    flops = 4 * B_pad * T * D                          # attention: scores + context (VPU)
    for layer in range(num_layers):
        in_dim = D if layer == 0 else 2 * H
        flops += 2 * B_pad * in_dim * 3 * gstride      # fused bidirectional i/g/o matmul
    flops += 2 * B_pad * 2 * H * O_pad                 # fc
    transcendentals = B_pad * (T + num_layers * 4 * 2 * H + 2)
    bytes_accessed = int(
        x_flat.size * x_flat.dtype.itemsize
        + weight_bytes
        + B_pad * O_pad * 4
    )

    kernel = functools.partial(_bilstm_kernel, num_layers, hidden_dim, T, D, gstride)
    out = pl.pallas_call(
        kernel,
        out_shape=jax.ShapeDtypeStruct((B_pad, O_pad), jnp.float32),
        grid=grid,
        in_specs=in_specs,
        out_specs=pl.BlockSpec((TB, O_pad), lambda i: (i, 0)),
        compiler_params=pltpu.CompilerParams(
            dimension_semantics=("parallel",),         # batch tiles shard across TCs
            vmem_limit_bytes=vmem_limit),
        cost_estimate=pl.CostEstimate(
            flops=int(flops),
            transcendentals=int(transcendentals),
            bytes_accessed=bytes_accessed),
    )(*inputs)
    return out[:B, :output_dim]


def init_params(key, *, input_dim, hidden_dim, output_dim, num_layers, lane_pad=128):
    """Deterministic synthetic parameters with PyTorch-matching shapes/init ranges,
    packed for the fused kernel:
      * both LSTM directions fused; only i/g/o gates kept (forget gate is dead for a
        length-1 sequence with c0 = 0); b_hh folded into the bias (h0 = 0);
      * each 2H-wide gate group aligned to a 128-lane boundary (stride `gstride`);
      * fc lane-padded to 128 output columns; matmul weights bf16, biases/LN params f32.
    """
    H = hidden_dim
    gsz = 2 * H
    gstride = _round_up(gsz, lane_pad)
    bound = 1.0 / math.sqrt(H)
    params = {
        "ln1_g": jnp.ones((1, input_dim), jnp.float32),
        "ln1_b": jnp.zeros((1, input_dim), jnp.float32),
        "ln2_g": jnp.ones((1, 2 * H), jnp.float32),
        "ln2_b": jnp.zeros((1, 2 * H), jnp.float32),
        "lstm": [],
    }
    kept_gates = (0, 2, 3)                             # PyTorch gate order [i, f, g, o]
    for layer in range(num_layers):
        in_dim = input_dim if layer == 0 else 2 * H
        w_dirs, b_dirs = [], []
        for _ in range(2):                             # forward, backward
            key, k1, k2, k3 = jax.random.split(key, 4)
            w_ih = jax.random.uniform(k1, (4 * H, in_dim), jnp.float32, -bound, bound)
            b_ih = jax.random.uniform(k2, (4 * H,), jnp.float32, -bound, bound)
            b_hh = jax.random.uniform(k3, (4 * H,), jnp.float32, -bound, bound)
            w_dirs.append(jnp.transpose(w_ih))         # (in_dim, 4H)
            b_dirs.append(b_ih + b_hh)                 # b_hh folded (h0 = 0)
        w_packed = jnp.zeros((in_dim, 3 * gstride), jnp.float32)
        b_packed = jnp.zeros((3 * gstride,), jnp.float32)
        for slot, g in enumerate(kept_gates):          # [i_f,i_b | g_f,g_b | o_f,o_b]
            for d in range(2):
                c0 = slot * gstride + d * H
                w_packed = w_packed.at[:, c0:c0 + H].set(w_dirs[d][:, g * H:(g + 1) * H])
                b_packed = b_packed.at[c0:c0 + H].set(b_dirs[d][g * H:(g + 1) * H])
        params["lstm"].append({
            "w_packed": w_packed.astype(jnp.bfloat16),         # (in_dim, 3*gstride)
            "b_packed": b_packed.reshape(1, 3 * gstride),       # (1, 3*gstride) f32
        })
    key, kw, kb = jax.random.split(key, 3)
    fc_bound = 1.0 / math.sqrt(2 * H)
    fc_w = jax.random.uniform(kw, (output_dim, 2 * H), jnp.float32, -fc_bound, fc_bound)
    fc_b = jax.random.uniform(kb, (output_dim,), jnp.float32, -fc_bound, fc_bound)
    O_pad = _round_up(output_dim, lane_pad)            # lane-dense output slab
    fc_w_T = jnp.zeros((2 * H, O_pad), jnp.float32).at[:, :output_dim].set(jnp.transpose(fc_w))
    fc_b_p = jnp.zeros((1, O_pad), jnp.float32).at[0, :output_dim].set(fc_b)
    params["fc_w_T"] = fc_w_T.astype(jnp.bfloat16)
    params["fc_b"] = fc_b_p
    return params


if __name__ == "__main__":
    B, T = 2, 8            # batch, sequence length
    INPUT_DIM = 32
    HIDDEN_DIM = 32
    OUTPUT_DIM = 4
    NUM_LAYERS = 2

    key = jax.random.PRNGKey(0)
    key, kx, kp = jax.random.split(key, 3)
    x = jax.random.normal(kx, (B, T, INPUT_DIM), jnp.float32)
    params = init_params(
        kp,
        input_dim=INPUT_DIM,
        hidden_dim=HIDDEN_DIM,
        output_dim=OUTPUT_DIM,
        num_layers=NUM_LAYERS,
    )

    out = bilstm_classifier_forward(
        x,
        params,
        num_layers=NUM_LAYERS,
        hidden_dim=HIDDEN_DIM,
        output_dim=OUTPUT_DIM,
    )
    out = jax.block_until_ready(out)
    assert out.shape == (B, OUTPUT_DIM)
    assert bool(jnp.all(jnp.isfinite(out)))
    print("KERNEL_OK")
</pallas_src>

<mosaic_0001>
module attributes {stable_mosaic.version = 11 : i64} {
  func.func @_bilstm_kernel(%arg0: i32, %arg1: memref<16x256xbf16, #tpu.memory_space<vmem>>, %arg2: memref<1x32xf32, #tpu.memory_space<vmem>>, %arg3: memref<1x32xf32, #tpu.memory_space<vmem>>, %arg4: memref<32x384xbf16, #tpu.memory_space<vmem>>, %arg5: memref<1x384xf32, #tpu.memory_space<vmem>>, %arg6: memref<64x384xbf16, #tpu.memory_space<vmem>>, %arg7: memref<1x384xf32, #tpu.memory_space<vmem>>, %arg8: memref<1x64xf32, #tpu.memory_space<vmem>>, %arg9: memref<1x64xf32, #tpu.memory_space<vmem>>, %arg10: memref<64x128xbf16, #tpu.memory_space<vmem>>, %arg11: memref<1x128xf32, #tpu.memory_space<vmem>>, %arg12: memref<16x128xf32, #tpu.memory_space<vmem>>) attributes {dimension_semantics = [#tpu.dimension_semantics<parallel>], iteration_bounds = array<i64: 1>, scalar_prefetch = 0 : i64, scratch_operands = 0 : i64, tpu.core_type = #tpu.core_type<tc>, window_params = [{transform_indices = @transform_0, window_bounds = array<i64: 16, 256>}, {pipeline_mode = #tpu.pipeline_mode<synchronous>, transform_indices = @transform_1, window_bounds = array<i64: 1, 32>}, {pipeline_mode = #tpu.pipeline_mode<synchronous>, transform_indices = @transform_2, window_bounds = array<i64: 1, 32>}, {pipeline_mode = #tpu.pipeline_mode<synchronous>, transform_indices = @transform_3, window_bounds = array<i64: 32, 384>}, {pipeline_mode = #tpu.pipeline_mode<synchronous>, transform_indices = @transform_4, window_bounds = array<i64: 1, 384>}, {pipeline_mode = #tpu.pipeline_mode<synchronous>, transform_indices = @transform_5, window_bounds = array<i64: 64, 384>}, {pipeline_mode = #tpu.pipeline_mode<synchronous>, transform_indices = @transform_6, window_bounds = array<i64: 1, 384>}, {pipeline_mode = #tpu.pipeline_mode<synchronous>, transform_indices = @transform_7, window_bounds = array<i64: 1, 64>}, {pipeline_mode = #tpu.pipeline_mode<synchronous>, transform_indices = @transform_8, window_bounds = array<i64: 1, 64>}, {pipeline_mode = #tpu.pipeline_mode<synchronous>, transform_indices = @transform_9, window_bounds = array<i64: 64, 128>}, {pipeline_mode = #tpu.pipeline_mode<synchronous>, transform_indices = @transform_10, window_bounds = array<i64: 1, 128>}, {transform_indices = @transform_11, window_bounds = array<i64: 16, 128>}]} {
    %c0 = arith.constant 0 : index
    %c0_0 = arith.constant 0 : index
    %0 = vector.load %arg1[%c0, %c0_0] : memref<16x256xbf16, #tpu.memory_space<vmem>>, vector<16x256xbf16>
    %1 = arith.extf %0 : vector<16x256xbf16> to vector<16x256xf32>
    %2 = vector.extract_strided_slice %1 {offsets = [0, 224], sizes = [16, 32], strides = [1, 1]} : vector<16x256xf32> to vector<16x32xf32>
    %3 = vector.extract_strided_slice %1 {offsets = [0, 0], sizes = [16, 32], strides = [1, 1]} : vector<16x256xf32> to vector<16x32xf32>
    %4 = arith.mulf %2, %3 : vector<16x32xf32>
    %cst = arith.constant dense<0.000000e+00> : vector<16xf32>
    %5 = vector.multi_reduction <add>, %4, %cst [1] : vector<16x32xf32> to vector<16xf32>
    %6 = vector.shape_cast %5 : vector<16xf32> to vector<16x1xf32>
    %7 = vector.extract_strided_slice %1 {offsets = [0, 32], sizes = [16, 32], strides = [1, 1]} : vector<16x256xf32> to vector<16x32xf32>
    %8 = arith.mulf %2, %7 : vector<16x32xf32>
    %cst_1 = arith.constant dense<0.000000e+00> : vector<16xf32>
    %9 = vector.multi_reduction <add>, %8, %cst_1 [1] : vector<16x32xf32> to vector<16xf32>
    %10 = vector.shape_cast %9 : vector<16xf32> to vector<16x1xf32>
    %11 = vector.extract_strided_slice %1 {offsets = [0, 64], sizes = [16, 32], strides = [1, 1]} : vector<16x256xf32> to vector<16x32xf32>
    %12 = arith.mulf %2, %11 : vector<16x32xf32>
    %cst_2 = arith.constant dense<0.000000e+00> : vector<16xf32>
    %13 = vector.multi_reduction <add>, %12, %cst_2 [1] : vector<16x32xf32> to vector<16xf32>
    %14 = vector.shape_cast %13 : vector<16xf32> to vector<16x1xf32>
    %15 = vector.extract_strided_slice %1 {offsets = [0, 96], sizes = [16, 32], strides = [1, 1]} : vector<16x256xf32> to vector<16x32xf32>
    %16 = arith.mulf %2, %15 : vector<16x32xf32>
    %cst_3 = arith.constant dense<0.000000e+00> : vector<16xf32>
    %17 = vector.multi_reduction <add>, %16, %cst_3 [1] : vector<16x32xf32> to vector<16xf32>
    %18 = vector.shape_cast %17 : vector<16xf32> to vector<16x1xf32>
    %19 = vector.extract_strided_slice %1 {offsets = [0, 128], sizes = [16, 32], strides = [1, 1]} : vector<16x256xf32> to vector<16x32xf32>
    %20 = arith.mulf %2, %19 : vector<16x32xf32>
    %cst_4 = arith.constant dense<0.000000e+00> : vector<16xf32>
    %21 = vector.multi_reduction <add>, %20, %cst_4 [1] : vector<16x32xf32> to vector<16xf32>
    %22 = vector.shape_cast %21 : vector<16xf32> to vector<16x1xf32>
    %23 = vector.extract_strided_slice %1 {offsets = [0, 160], sizes = [16, 32], strides = [1, 1]} : vector<16x256xf32> to vector<16x32xf32>
    %24 = arith.mulf %2, %23 : vector<16x32xf32>
    %cst_5 = arith.constant dense<0.000000e+00> : vector<16xf32>
    %25 = vector.multi_reduction <add>, %24, %cst_5 [1] : vector<16x32xf32> to vector<16xf32>
    %26 = vector.shape_cast %25 : vector<16xf32> to vector<16x1xf32>
    %27 = vector.extract_strided_slice %1 {offsets = [0, 192], sizes = [16, 32], strides = [1, 1]} : vector<16x256xf32> to vector<16x32xf32>
    %28 = arith.mulf %2, %27 : vector<16x32xf32>
    %cst_6 = arith.constant dense<0.000000e+00> : vector<16xf32>
    %29 = vector.multi_reduction <add>, %28, %cst_6 [1] : vector<16x32xf32> to vector<16xf32>
    %30 = vector.shape_cast %29 : vector<16xf32> to vector<16x1xf32>
    %31 = vector.extract_strided_slice %1 {offsets = [0, 224], sizes = [16, 32], strides = [1, 1]} : vector<16x256xf32> to vector<16x32xf32>
    %32 = arith.mulf %2, %31 : vector<16x32xf32>
    %cst_7 = arith.constant dense<0.000000e+00> : vector<16xf32>
    %33 = vector.multi_reduction <add>, %32, %cst_7 [1] : vector<16x32xf32> to vector<16xf32>
    %34 = vector.shape_cast %33 : vector<16xf32> to vector<16x1xf32>
    %35 = tpu.concatenate %6, %10, %14, %18, %22, %26, %30, %34 in 1 : vector<16x1xf32>, vector<16x1xf32>, vector<16x1xf32>, vector<16x1xf32>, vector<16x1xf32>, vector<16x1xf32>, vector<16x1xf32>, vector<16x1xf32> -> vector<16x8xf32>
    %cst_8 = arith.constant dense<0xFF800000> : vector<16xf32>
    %36 = vector.multi_reduction <maximumf>, %35, %cst_8 [1] : vector<16x8xf32> to vector<16xf32>
    %37 = vector.shape_cast %36 : vector<16xf32> to vector<16x1xf32>
    %38 = vector.broadcast %37 : vector<16x1xf32> to vector<16x8xf32>
    %39 = arith.subf %35, %38 : vector<16x8xf32>
    %40 = math.exp %39 : vector<16x8xf32>
    %cst_9 = arith.constant dense<0.000000e+00> : vector<16xf32>
    %41 = vector.multi_reduction <add>, %40, %cst_9 [1] : vector<16x8xf32> to vector<16xf32>
    %42 = vector.shape_cast %41 : vector<16xf32> to vector<16x1xf32>
    %43 = tpu.reciprocal %42 {approx = true} : vector<16x1xf32> -> vector<16x1xf32>
    %44 = vector.broadcast %43 : vector<16x1xf32> to vector<16x8xf32>
    %45 = arith.mulf %40, %44 : vector<16x8xf32>
    %cst_10 = arith.constant 0.000000e+00 : f32
    %46 = vector.broadcast %cst_10 : f32 to vector<16x32xf32>
    %47 = vector.extract_strided_slice %45 {offsets = [0, 0], sizes = [16, 1], strides = [1, 1]} : vector<16x8xf32> to vector<16x1xf32>
    %48 = vector.extract_strided_slice %1 {offsets = [0, 0], sizes = [16, 32], strides = [1, 1]} : vector<16x256xf32> to vector<16x32xf32>
    %49 = vector.broadcast %47 : vector<16x1xf32> to vector<16x32xf32>
    %50 = arith.mulf %49, %48 : vector<16x32xf32>
    %51 = arith.addf %46, %50 : vector<16x32xf32>
    %52 = vector.extract_strided_slice %45 {offsets = [0, 1], sizes = [16, 1], strides = [1, 1]} : vector<16x8xf32> to vector<16x1xf32>
    %53 = vector.extract_strided_slice %1 {offsets = [0, 32], sizes = [16, 32], strides = [1, 1]} : vector<16x256xf32> to vector<16x32xf32>
    %54 = vector.broadcast %52 : vector<16x1xf32> to vector<16x32xf32>
    %55 = arith.mulf %54, %53 : vector<16x32xf32>
    %56 = arith.addf %51, %55 : vector<16x32xf32>
    %57 = vector.extract_strided_slice %45 {offsets = [0, 2], sizes = [16, 1], strides = [1, 1]} : vector<16x8xf32> to vector<16x1xf32>
    %58 = vector.extract_strided_slice %1 {offsets = [0, 64], sizes = [16, 32], strides = [1, 1]} : vector<16x256xf32> to vector<16x32xf32>
    %59 = vector.broadcast %57 : vector<16x1xf32> to vector<16x32xf32>
    %60 = arith.mulf %59, %58 : vector<16x32xf32>
    %61 = arith.addf %56, %60 : vector<16x32xf32>
    %62 = vector.extract_strided_slice %45 {offsets = [0, 3], sizes = [16, 1], strides = [1, 1]} : vector<16x8xf32> to vector<16x1xf32>
    %63 = vector.extract_strided_slice %1 {offsets = [0, 96], sizes = [16, 32], strides = [1, 1]} : vector<16x256xf32> to vector<16x32xf32>
    %64 = vector.broadcast %62 : vector<16x1xf32> to vector<16x32xf32>
    %65 = arith.mulf %64, %63 : vector<16x32xf32>
    %66 = arith.addf %61, %65 : vector<16x32xf32>
    %67 = vector.extract_strided_slice %45 {offsets = [0, 4], sizes = [16, 1], strides = [1, 1]} : vector<16x8xf32> to vector<16x1xf32>
    %68 = vector.extract_strided_slice %1 {offsets = [0, 128], sizes = [16, 32], strides = [1, 1]} : vector<16x256xf32> to vector<16x32xf32>
    %69 = vector.broadcast %67 : vector<16x1xf32> to vector<16x32xf32>
    %70 = arith.mulf %69, %68 : vector<16x32xf32>
    %71 = arith.addf %66, %70 : vector<16x32xf32>
    %72 = vector.extract_strided_slice %45 {offsets = [0, 5], sizes = [16, 1], strides = [1, 1]} : vector<16x8xf32> to vector<16x1xf32>
    %73 = vector.extract_strided_slice %1 {offsets = [0, 160], sizes = [16, 32], strides = [1, 1]} : vector<16x256xf32> to vector<16x32xf32>
    %74 = vector.broadcast %72 : vector<16x1xf32> to vector<16x32xf32>
    %75 = arith.mulf %74, %73 : vector<16x32xf32>
    %76 = arith.addf %71, %75 : vector<16x32xf32>
    %77 = vector.extract_strided_slice %45 {offsets = [0, 6], sizes = [16, 1], strides = [1, 1]} : vector<16x8xf32> to vector<16x1xf32>
    %78 = vector.extract_strided_slice %1 {offsets = [0, 192], sizes = [16, 32], strides = [1, 1]} : vector<16x256xf32> to vector<16x32xf32>
    %79 = vector.broadcast %77 : vector<16x1xf32> to vector<16x32xf32>
    %80 = arith.mulf %79, %78 : vector<16x32xf32>
    %81 = arith.addf %76, %80 : vector<16x32xf32>
    %82 = vector.extract_strided_slice %45 {offsets = [0, 7], sizes = [16, 1], strides = [1, 1]} : vector<16x8xf32> to vector<16x1xf32>
    %83 = vector.extract_strided_slice %1 {offsets = [0, 224], sizes = [16, 32], strides = [1, 1]} : vector<16x256xf32> to vector<16x32xf32>
    %84 = vector.broadcast %82 : vector<16x1xf32> to vector<16x32xf32>
    %85 = arith.mulf %84, %83 : vector<16x32xf32>
    %86 = arith.addf %81, %85 : vector<16x32xf32>
    %c0_11 = arith.constant 0 : index
    %c0_12 = arith.constant 0 : index
    %87 = vector.load %arg2[%c0_11, %c0_12] : memref<1x32xf32, #tpu.memory_space<vmem>>, vector<1x32xf32>
    %c0_13 = arith.constant 0 : index
    %c0_14 = arith.constant 0 : index
    %88 = vector.load %arg3[%c0_13, %c0_14] : memref<1x32xf32, #tpu.memory_space<vmem>>, vector<1x32xf32>
    %cst_15 = arith.constant dense<0.000000e+00> : vector<16xf32>
    %89 = vector.multi_reduction <add>, %86, %cst_15 [1] : vector<16x32xf32> to vector<16xf32>
    %90 = vector.shape_cast %89 : vector<16xf32> to vector<16x1xf32>
    %cst_16 = arith.constant 3.200000e+01 : f32
    %91 = vector.broadcast %cst_16 : f32 to vector<16x1xf32>
    %92 = arith.divf %90, %91 : vector<16x1xf32>
    %93 = vector.broadcast %92 : vector<16x1xf32> to vector<16x32xf32>
    %94 = arith.subf %86, %93 : vector<16x32xf32>
    %95 = arith.mulf %94, %94 : vector<16x32xf32>
    %cst_17 = arith.constant dense<0.000000e+00> : vector<16xf32>
    %96 = vector.multi_reduction <add>, %95, %cst_17 [1] : vector<16x32xf32> to vector<16xf32>
    %97 = vector.shape_cast %96 : vector<16xf32> to vector<16x1xf32>
    %cst_18 = arith.constant 3.200000e+01 : f32
    %98 = vector.broadcast %cst_18 : f32 to vector<16x1xf32>
    %99 = arith.divf %97, %98 : vector<16x1xf32>
    %100 = vector.broadcast %92 : vector<16x1xf32> to vector<16x32xf32>
    %101 = arith.subf %86, %100 : vector<16x32xf32>
    %cst_19 = arith.constant 9.99999974E-6 : f32
    %102 = vector.broadcast %cst_19 : f32 to vector<16x1xf32>
    %103 = arith.addf %99, %102 : vector<16x1xf32>
    %104 = math.rsqrt %103 : vector<16x1xf32>
    %105 = vector.broadcast %104 : vector<16x1xf32> to vector<16x32xf32>
    %106 = arith.mulf %101, %105 : vector<16x32xf32>
    %107 = vector.broadcast %87 : vector<1x32xf32> to vector<16x32xf32>
    %108 = arith.mulf %106, %107 : vector<16x32xf32>
    %109 = vector.broadcast %88 : vector<1x32xf32> to vector<16x32xf32>
    %110 = arith.addf %108, %109 : vector<16x32xf32>
    %111 = arith.truncf %110 : vector<16x32xf32> to vector<16x32xbf16>
    %c0_20 = arith.constant 0 : index
    %c0_21 = arith.constant 0 : index
    %112 = vector.load %arg4[%c0_20, %c0_21] : memref<32x384xbf16, #tpu.memory_space<vmem>>, vector<32x384xbf16>
    %cst_22 = arith.constant dense<0.000000e+00> : vector<16x384xf32>
    %113 = tpu.matmul %111, %112, %cst_22 {dimension_numbers = #tpu.dot_dimension_numbers<[1], [0], [0], [1], [0, 0, 1, 1], [], []>} : vector<16x32xbf16>, vector<32x384xbf16>, vector<16x384xf32> -> vector<16x384xf32>
    %c0_23 = arith.constant 0 : index
    %c0_24 = arith.constant 0 : index
    %114 = vector.load %arg5[%c0_23, %c0_24] : memref<1x384xf32, #tpu.memory_space<vmem>>, vector<1x384xf32>
    %115 = vector.broadcast %114 : vector<1x384xf32> to vector<16x384xf32>
    %116 = arith.addf %113, %115 : vector<16x384xf32>
    %117 = vector.extract_strided_slice %116 {offsets = [0, 0], sizes = [16, 64], strides = [1, 1]} : vector<16x384xf32> to vector<16x64xf32>
    %118 = arith.negf %117 : vector<16x64xf32>
    %119 = math.exp %118 : vector<16x64xf32>
    %cst_25 = arith.constant 1.000000e+00 : f32
    %120 = vector.broadcast %cst_25 : f32 to vector<16x64xf32>
    %121 = arith.addf %120, %119 : vector<16x64xf32>
    %122 = arith.divf %120, %121 : vector<16x64xf32>
    %123 = vector.extract_strided_slice %116 {offsets = [0, 128], sizes = [16, 64], strides = [1, 1]} : vector<16x384xf32> to vector<16x64xf32>
    %124 = math.tanh %123 : vector<16x64xf32>
    %125 = vector.extract_strided_slice %116 {offsets = [0, 256], sizes = [16, 64], strides = [1, 1]} : vector<16x384xf32> to vector<16x64xf32>
    %126 = arith.negf %125 : vector<16x64xf32>
    %127 = math.exp %126 : vector<16x64xf32>
    %cst_26 = arith.constant 1.000000e+00 : f32
    %128 = vector.broadcast %cst_26 : f32 to vector<16x64xf32>
    %129 = arith.addf %128, %127 : vector<16x64xf32>
    %130 = arith.divf %128, %129 : vector<16x64xf32>
    %131 = arith.mulf %122, %124 : vector<16x64xf32>
    %132 = math.tanh %131 : vector<16x64xf32>
    %133 = arith.mulf %130, %132 : vector<16x64xf32>
    %134 = arith.truncf %133 : vector<16x64xf32> to vector<16x64xbf16>
    %c0_27 = arith.constant 0 : index
    %c0_28 = arith.constant 0 : index
    %135 = vector.load %arg6[%c0_27, %c0_28] : memref<64x384xbf16, #tpu.memory_space<vmem>>, vector<64x384xbf16>
    %cst_29 = arith.constant dense<0.000000e+00> : vector<16x384xf32>
    %136 = tpu.matmul %134, %135, %cst_29 {dimension_numbers = #tpu.dot_dimension_numbers<[1], [0], [0], [1], [0, 0, 1, 1], [], []>} : vector<16x64xbf16>, vector<64x384xbf16>, vector<16x384xf32> -> vector<16x384xf32>
    %c0_30 = arith.constant 0 : index
    %c0_31 = arith.constant 0 : index
    %137 = vector.load %arg7[%c0_30, %c0_31] : memref<1x384xf32, #tpu.memory_space<vmem>>, vector<1x384xf32>
    %138 = vector.broadcast %137 : vector<1x384xf32> to vector<16x384xf32>
    %139 = arith.addf %136, %138 : vector<16x384xf32>
    %140 = vector.extract_strided_slice %139 {offsets = [0, 0], sizes = [16, 64], strides = [1, 1]} : vector<16x384xf32> to vector<16x64xf32>
    %141 = arith.negf %140 : vector<16x64xf32>
    %142 = math.exp %141 : vector<16x64xf32>
    %cst_32 = arith.constant 1.000000e+00 : f32
    %143 = vector.broadcast %cst_32 : f32 to vector<16x64xf32>
    %144 = arith.addf %143, %142 : vector<16x64xf32>
    %145 = arith.divf %143, %144 : vector<16x64xf32>
    %146 = vector.extract_strided_slice %139 {offsets = [0, 128], sizes = [16, 64], strides = [1, 1]} : vector<16x384xf32> to vector<16x64xf32>
    %147 = math.tanh %146 : vector<16x64xf32>
    %148 = vector.extract_strided_slice %139 {offsets = [0, 256], sizes = [16, 64], strides = [1, 1]} : vector<16x384xf32> to vector<16x64xf32>
    %149 = arith.negf %148 : vector<16x64xf32>
    %150 = math.exp %149 : vector<16x64xf32>
    %cst_33 = arith.constant 1.000000e+00 : f32
    %151 = vector.broadcast %cst_33 : f32 to vector<16x64xf32>
    %152 = arith.addf %151, %150 : vector<16x64xf32>
    %153 = arith.divf %151, %152 : vector<16x64xf32>
    %154 = arith.mulf %145, %147 : vector<16x64xf32>
    %155 = math.tanh %154 : vector<16x64xf32>
    %156 = arith.mulf %153, %155 : vector<16x64xf32>
    %c0_34 = arith.constant 0 : index
    %c0_35 = arith.constant 0 : index
    %157 = vector.load %arg8[%c0_34, %c0_35] : memref<1x64xf32, #tpu.memory_space<vmem>>, vector<1x64xf32>
    %c0_36 = arith.constant 0 : index
    %c0_37 = arith.constant 0 : index
    %158 = vector.load %arg9[%c0_36, %c0_37] : memref<1x64xf32, #tpu.memory_space<vmem>>, vector<1x64xf32>
    %cst_38 = arith.constant dense<0.000000e+00> : vector<16xf32>
    %159 = vector.multi_reduction <add>, %156, %cst_38 [1] : vector<16x64xf32> to vector<16xf32>
    %160 = vector.shape_cast %159 : vector<16xf32> to vector<16x1xf32>
    %cst_39 = arith.constant 6.400000e+01 : f32
    %161 = vector.broadcast %cst_39 : f32 to vector<16x1xf32>
    %162 = arith.divf %160, %161 : vector<16x1xf32>
    %163 = vector.broadcast %162 : vector<16x1xf32> to vector<16x64xf32>
    %164 = arith.subf %156, %163 : vector<16x64xf32>
    %165 = arith.mulf %164, %164 : vector<16x64xf32>
    %cst_40 = arith.constant dense<0.000000e+00> : vector<16xf32>
    %166 = vector.multi_reduction <add>, %165, %cst_40 [1] : vector<16x64xf32> to vector<16xf32>
    %167 = vector.shape_cast %166 : vector<16xf32> to vector<16x1xf32>
    %cst_41 = arith.constant 6.400000e+01 : f32
    %168 = vector.broadcast %cst_41 : f32 to vector<16x1xf32>
    %169 = arith.divf %167, %168 : vector<16x1xf32>
    %170 = vector.broadcast %162 : vector<16x1xf32> to vector<16x64xf32>
    %171 = arith.subf %156, %170 : vector<16x64xf32>
    %cst_42 = arith.constant 9.99999974E-6 : f32
    %172 = vector.broadcast %cst_42 : f32 to vector<16x1xf32>
    %173 = arith.addf %169, %172 : vector<16x1xf32>
    %174 = math.rsqrt %173 : vector<16x1xf32>
    %175 = vector.broadcast %174 : vector<16x1xf32> to vector<16x64xf32>
    %176 = arith.mulf %171, %175 : vector<16x64xf32>
    %177 = vector.broadcast %157 : vector<1x64xf32> to vector<16x64xf32>
    %178 = arith.mulf %176, %177 : vector<16x64xf32>
    %179 = vector.broadcast %158 : vector<1x64xf32> to vector<16x64xf32>
    %180 = arith.addf %178, %179 : vector<16x64xf32>
    %181 = arith.truncf %180 : vector<16x64xf32> to vector<16x64xbf16>
    %c0_43 = arith.constant 0 : index
    %c0_44 = arith.constant 0 : index
    %182 = vector.load %arg10[%c0_43, %c0_44] : memref<64x128xbf16, #tpu.memory_space<vmem>>, vector<64x128xbf16>
    %cst_45 = arith.constant dense<0.000000e+00> : vector<16x128xf32>
    %183 = tpu.matmul %181, %182, %cst_45 {dimension_numbers = #tpu.dot_dimension_numbers<[1], [0], [0], [1], [0, 0, 1, 1], [], []>} : vector<16x64xbf16>, vector<64x128xbf16>, vector<16x128xf32> -> vector<16x128xf32>
    %c0_46 = arith.constant 0 : index
    %c0_47 = arith.constant 0 : index
    %184 = vector.load %arg11[%c0_46, %c0_47] : memref<1x128xf32, #tpu.memory_space<vmem>>, vector<1x128xf32>
    %185 = vector.broadcast %184 : vector<1x128xf32> to vector<16x128xf32>
    %186 = arith.addf %183, %185 : vector<16x128xf32>
    %c0_48 = arith.constant 0 : index
    %c0_49 = arith.constant 0 : index
    %187 = vector.load %arg12[%c0_48, %c0_49] : memref<16x128xf32, #tpu.memory_space<vmem>>, vector<16x128xf32>
    tpu.vector_store %arg12[%c0_48, %c0_49], %186 {strides = array<i32>} : memref<16x128xf32, #tpu.memory_space<vmem>>, vector<16x128xf32>,
    return
  }
  func.func @transform_0(%arg0: i32) -> (i32, i32) {
    %c0_i32 = arith.constant 0 : i32
    %c0_i32_0 = arith.constant 0 : i32
    return %arg0, %c0_i32 : i32, i32
  }
  func.func @transform_1(%arg0: i32) -> (i32, i32) {
    %c0_i32 = arith.constant 0 : i32
    %c0_i32_0 = arith.constant 0 : i32
    %c0_i32_1 = arith.constant 0 : i32
    return %c0_i32, %c0_i32_0 : i32, i32
  }
  func.func @transform_2(%arg0: i32) -> (i32, i32) {
    %c0_i32 = arith.constant 0 : i32
    %c0_i32_0 = arith.constant 0 : i32
    %c0_i32_1 = arith.constant 0 : i32
    return %c0_i32, %c0_i32_0 : i32, i32
  }
  func.func @transform_3(%arg0: i32) -> (i32, i32) {
    %c0_i32 = arith.constant 0 : i32
    %c0_i32_0 = arith.constant 0 : i32
    %c0_i32_1 = arith.constant 0 : i32
    return %c0_i32, %c0_i32_0 : i32, i32
  }
  func.func @transform_4(%arg0: i32) -> (i32, i32) {
    %c0_i32 = arith.constant 0 : i32
    %c0_i32_0 = arith.constant 0 : i32
    %c0_i32_1 = arith.constant 0 : i32
    return %c0_i32, %c0_i32_0 : i32, i32
  }
  func.func @transform_5(%arg0: i32) -> (i32, i32) {
    %c0_i32 = arith.constant 0 : i32
    %c0_i32_0 = arith.constant 0 : i32
    %c0_i32_1 = arith.constant 0 : i32
    return %c0_i32, %c0_i32_0 : i32, i32
  }
  func.func @transform_6(%arg0: i32) -> (i32, i32) {
    %c0_i32 = arith.constant 0 : i32
    %c0_i32_0 = arith.constant 0 : i32
    %c0_i32_1 = arith.constant 0 : i32
    return %c0_i32, %c0_i32_0 : i32, i32
  }
  func.func @transform_7(%arg0: i32) -> (i32, i32) {
    %c0_i32 = arith.constant 0 : i32
    %c0_i32_0 = arith.constant 0 : i32
    %c0_i32_1 = arith.constant 0 : i32
    return %c0_i32, %c0_i32_0 : i32, i32
  }
  func.func @transform_8(%arg0: i32) -> (i32, i32) {
    %c0_i32 = arith.constant 0 : i32
    %c0_i32_0 = arith.constant 0 : i32
    %c0_i32_1 = arith.constant 0 : i32
    return %c0_i32, %c0_i32_0 : i32, i32
  }
  func.func @transform_9(%arg0: i32) -> (i32, i32) {
    %c0_i32 = arith.constant 0 : i32
    %c0_i32_0 = arith.constant 0 : i32
    %c0_i32_1 = arith.constant 0 : i32
    return %c0_i32, %c0_i32_0 : i32, i32
  }
  func.func @transform_10(%arg0: i32) -> (i32, i32) {
    %c0_i32 = arith.constant 0 : i32
    %c0_i32_0 = arith.constant 0 : i32
    %c0_i32_1 = arith.constant 0 : i32
    return %c0_i32, %c0_i32_0 : i32, i32
  }
  func.func @transform_11(%arg0: i32) -> (i32, i32) {
    %c0_i32 = arith.constant 0 : i32
    %c0_i32_0 = arith.constant 0 : i32
    return %arg0, %c0_i32 : i32, i32
  }
}

</mosaic_0001>

<bundles_post_ra>
// kernel: tpu_custom_call.1
= control target key start
LH: loop header
LB: loop body
LE: loop exit
PB: predicated region body
PF: predicated region fallthrough
CT: control target
= control target key end

     0   :  { %16 = vsyncpa [#allocation3], 0  ;;  %s1871_s0 = inlined_call_operand.hbm [shape: bf16[16,256], index: 0, kind: input, shape index: {}]   ;;  %s1872_s1 = inlined_call_operand.vmem [shape: f32[1,32], index: 1, kind: input, shape index: {}]   ;;  %s1873_s2 = inlined_call_operand.vmem [shape: f32[1,32], index: 2, kind: input, shape index: {}]   ;;  %s1874_s3 = inlined_call_operand.hbm [shape: bf16[32,384], index: 3, kind: input, shape index: {}]   ;;  %s1875_s4 = inlined_call_operand.hbm [shape: f32[1,384], index: 4, kind: input, shape index: {}]   ;;  %s1876_s5 = inlined_call_operand.hbm [shape: bf16[64,384], index: 5, kind: input, shape index: {}]   ;;  %s1877_s6 = inlined_call_operand.hbm [shape: f32[1,384], index: 6, kind: input, shape index: {}]   ;;  %s1878_s7 = inlined_call_operand.hbm [shape: f32[1,64], index: 7, kind: input, shape index: {}]   ;;  %s1879_s8 = inlined_call_operand.hbm [shape: f32[1,64], index: 8, kind: input, shape index: {}]   ;;  %s1880_s9 = inlined_call_operand.vmem [shape: bf16[64,128], index: 9, kind: input, shape index: {}]   ;;  %s1881_s10 = inlined_call_operand.vmem [shape: f32[1,128], index: 10, kind: input, shape index: {}]   ;;  %s1882_s11 = inlined_call_operand.hbm [shape: f32[16,128], index: 11, kind: output, shape index: {}]  }
   0x1   :  { %17 = vsyncpa [#allocation6], 0 }
   0x2   :  { %18 = vsyncpa [#allocation9], 0 }
   0x3   :  { %19 = vsyncpa [#allocation12], 0 }
   0x4   :  { %20 = vsyncpa [#allocation4], 0  ;;  %s1513_s17 = smov [#allocation5]   ;;  %s1327_s21 = scalar_lea.hbm %s1874_s3, 768 }
   0x5   :  { %s42_s18 = sshll.u32 %s1513_s17, 4  ;;  %p1328_p0 = scmp.ne.s32.totalorder %s1874_s3, %s1327_s21  ;;  %s43_s18 = int_to_ptr.vmem [resolvable:$true] %s42_s18 }
   0x6   :  { %p1331_p1 = scmp.lt.u32.totalorder %s1327_s21, %s1874_s3 }
   0x8   :  { %p1333_p2 = pnand %p1331_p1, %p1328_p0 }
   0xa   :  { %1336 = shalt.err (!%p1333_p2)
}
   0xb   :  { %s1337_s26 = scalar_lea.vmem %s43_s18, 768  ;;  %p1342_p4 = scmp.lt.s32.totalorder %s43_s18, %s43_s18 }
   0xc   :  { %p1338_p3 = scmp.ne.s32.totalorder %s43_s18, %s1337_s26  ;;  %p1343_p5 = scmp.lt.s32.totalorder %s1337_s26, %s1337_s26 }
   0xe   :  { %p1344_p6 = por %p1343_p5, %p1342_p4 }
  0x10   :  { %p1345_p7 = pnand %p1344_p6, %p1338_p3 }
  0x12   :  { %1348 = shalt.err (!%p1345_p7)
}
  0x13   :  { %s1514_s27 = smov 192   ;;  %s1515_s28 = smov 12  }
  0x14   :  { %48 = dma.hbm_to_vmem [thread:$0]  %s1874_s3, 768, %s43_s18, [#allocation6], %s1514_s27, %s1514_s27, %s1515_s28  }
  0x15   :  { %s1516_s12 = smov [#allocation8]   ;;  %s1517_s14 = smov [#allocation11]  }
  0x16   :  { %s64_s13 = sshll.u32 %s1516_s12, 4  ;;  %s87_s15 = sshll.u32 %s1517_s14, 4  ;;  %s65_s13 = int_to_ptr.vmem [resolvable:$true] %s64_s13  ;;  %s88_s15 = int_to_ptr.vmem [resolvable:$true] %s87_s15 }
  0x17   :  { %s1349_s19 = scalar_lea.hbm %s1876_s5, 1536 }
  0x18   :  { %p1350_p8 = scmp.ne.s32.totalorder %s1876_s5, %s1349_s19  ;;  %p1353_p9 = scmp.lt.u32.totalorder %s1349_s19, %s1876_s5 }
  0x1a   :  { %p1355_p10 = pnand %p1353_p9, %p1350_p8 }
  0x1c   :  { %1358 = shalt.err (!%p1355_p10)
}
  0x1d   :  { %s1359_s3 = scalar_lea.vmem %s65_s13, 1536  ;;  %p1364_p12 = scmp.lt.s32.totalorder %s65_s13, %s65_s13 }
  0x1e   :  { %p1360_p11 = scmp.ne.s32.totalorder %s65_s13, %s1359_s3  ;;  %p1365_p13 = scmp.lt.s32.totalorder %s1359_s3, %s1359_s3 }
  0x20   :  { %p1366_p0 = por %p1365_p13, %p1364_p12 }
  0x22   :  { %p1367_p1 = pnand %p1366_p0, %p1360_p11 }
  0x24   :  { %1370 = shalt.err (!%p1367_p1)
}
  0x25   :  { %70 = dma.hbm_to_vmem [thread:$0]  %s1876_s5, 1536, %s65_s13, [#allocation9], %s1514_s27, %s1514_s27, %s1515_s28  }
  0x26   :  { %s1371_s29 = scalar_lea.hbm %s1878_s7, 16 }
  0x27   :  { %p1372_p2 = scmp.ne.s32.totalorder %s1878_s7, %s1371_s29  ;;  %p1375_p3 = scmp.lt.u32.totalorder %s1371_s29, %s1878_s7 }
  0x29   :  { %p1377_p4 = pnand %p1375_p3, %p1372_p2 }
  0x2b   :  { %1380 = shalt.err (!%p1377_p4)
}
  0x2c   :  { %s1381_s17 = scalar_lea.vmem %s88_s15, 16  ;;  %s1385_s19 = scalar_lea.vmem %s88_s15, 32 }
  0x2d   :  { %p1382_p5 = scmp.ne.s32.totalorder %s88_s15, %s1381_s17  ;;  %p1386_p6 = scmp.lt.s32.totalorder %s88_s15, %s88_s15 }
  0x2e   :  { %p1387_p7 = scmp.lt.s32.totalorder %s1385_s19, %s1381_s17 }
  0x30   :  { %p1388_p8 = por %p1387_p7, %p1386_p6 }
  0x32   :  { %p1389_p9 = pnand %p1388_p8, %p1382_p5 }
  0x34   :  { %1392 = shalt.err (!%p1389_p9)
}
  0x35   :  { %90 = dma.hbm_to_vmem [thread:$0]  %s1878_s7, 16, %s88_s15, [#allocation12]  }
  0x36   :  { %s1518_s28 = smov [#allocation2]   ;;  %s1393_s22 = scalar_lea.hbm %s1871_s0, 256 }
  0x37   :  { %s26_s13 = sshll.u32 %s1518_s28, 4  ;;  %p1394_p10 = scmp.ne.s32.totalorder %s1871_s0, %s1393_s22  ;;  %s27_s13 = int_to_ptr.vmem [resolvable:$true] %s26_s13 }
  0x38   :  { %p1397_p11 = scmp.lt.u32.totalorder %s1393_s22, %s1871_s0 }
  0x3a   :  { %p1399_p12 = pnand %p1397_p11, %p1394_p10 }
  0x3c   :  { %1402 = shalt.err (!%p1399_p12)
}
  0x3d   :  { %s1403_s25 = scalar_lea.vmem %s27_s13, 256  ;;  %p1408_p0 = scmp.lt.s32.totalorder %s27_s13, %s27_s13 }
  0x3e   :  { %p1404_p13 = scmp.ne.s32.totalorder %s27_s13, %s1403_s25  ;;  %p1409_p1 = scmp.lt.s32.totalorder %s1403_s25, %s1403_s25 }
  0x40   :  { %p1410_p2 = por %p1409_p1, %p1408_p0 }
  0x42   :  { %p1411_p3 = pnand %p1410_p2, %p1404_p13 }
  0x44   :  { %1414 = shalt.err (!%p1411_p3)
}
  0x45   :  { %s1519_s7 = smov 128   ;;  %s1520_s15 = smov 8  }
  0x46   :  { %32 = dma.hbm_to_vmem [thread:$0]  %s1871_s0, 256, %s27_s13, [#allocation3], %s1519_s7, %s1519_s7, %s1520_s15  }
  0x47   :  { %s1521_s30 = smov [#allocation7]   ;;  %s1522_s14 = smov [#allocation10]  }
  0x48   :  { %s55_s12 = sshll.u32 %s1521_s30, 4  ;;  %s77_s16 = sshll.u32 %s1522_s14, 4  ;;  %s56_s12 = int_to_ptr.vmem [resolvable:$true] %s55_s12  ;;  %s78_s16 = int_to_ptr.vmem [resolvable:$true] %s77_s16 }
  0x49   :  { %s1415_s5 = scalar_lea.hbm %s1875_s4, 48 }
  0x4a   :  { %p1416_p4 = scmp.ne.s32.totalorder %s1875_s4, %s1415_s5  ;;  %p1419_p5 = scmp.lt.u32.totalorder %s1415_s5, %s1875_s4 }
  0x4c   :  { %p1421_p6 = pnand %p1419_p5, %p1416_p4 }
  0x4e   :  { %1424 = shalt.err (!%p1421_p6)
}
  0x4f   :  { %s1425_s0 = scalar_lea.vmem %s56_s12, 48  ;;  %s1429_s13 = scalar_lea.vmem %s56_s12, 64 }
  0x50   :  { %p1426_p7 = scmp.ne.s32.totalorder %s56_s12, %s1425_s0  ;;  %p1430_p8 = scmp.lt.s32.totalorder %s56_s12, %s56_s12 }
  0x51   :  { %p1431_p9 = scmp.lt.s32.totalorder %s1429_s13, %s1425_s0 }
  0x53   :  { %p1432_p10 = por %p1431_p9, %p1430_p8 }
  0x55   :  { %p1433_p11 = pnand %p1432_p10, %p1426_p7 }
  0x57   :  { %1436 = shalt.err (!%p1433_p11)
}
  0x58   :  { %58 = dma.hbm_to_vmem [thread:$0]  %s1875_s4, 48, %s56_s12, [#allocation6]  }
  0x59   :  { %s1437_s24 = scalar_lea.hbm %s1877_s6, 48 }
  0x5a   :  { %p1438_p12 = scmp.ne.s32.totalorder %s1877_s6, %s1437_s24  ;;  %p1441_p13 = scmp.lt.u32.totalorder %s1437_s24, %s1877_s6 }
  0x5c   :  { %p1443_p0 = pnand %p1441_p13, %p1438_p12 }
  0x5e   :  { %1446 = shalt.err (!%p1443_p0)
}
  0x5f   :  { %s1447_s14 = scalar_lea.vmem %s78_s16, 48  ;;  %s1451_s17 = scalar_lea.vmem %s78_s16, 64 }
  0x60   :  { %p1448_p1 = scmp.ne.s32.totalorder %s78_s16, %s1447_s14  ;;  %p1452_p2 = scmp.lt.s32.totalorder %s78_s16, %s78_s16 }
  0x61   :  { %p1453_p3 = scmp.lt.s32.totalorder %s1451_s17, %s1447_s14 }
  0x63   :  { %p1454_p4 = por %p1453_p3, %p1452_p2 }
  0x65   :  { %p1455_p5 = pnand %p1454_p4, %p1448_p1 }
  0x67   :  { %1458 = shalt.err (!%p1455_p5)
}
  0x68   :  { %80 = dma.hbm_to_vmem [thread:$0]  %s1877_s6, 48, %s78_s16, [#allocation9]  }
  0x69   :  { %s1523_s19 = smov [#allocation13]   ;;  %s1459_s20 = scalar_lea.hbm %s1879_s8, 16 }
  0x6a   :  { %s97_s5 = sshll.u32 %s1523_s19, 4  ;;  %p1460_p6 = scmp.ne.s32.totalorder %s1879_s8, %s1459_s20  ;;  %s98_s5 = int_to_ptr.vmem [resolvable:$true] %s97_s5 }
  0x6b   :  { %p1463_p7 = scmp.lt.u32.totalorder %s1459_s20, %s1879_s8 }
  0x6d   :  { %p1465_p8 = pnand %p1463_p7, %p1460_p6 }
  0x6f   :  { %1468 = shalt.err (!%p1465_p8)
}
  0x70   :  { %s1469_s23 = scalar_lea.vmem %s98_s5, 16  ;;  %s1473_s6 = scalar_lea.vmem %s98_s5, 32 }
  0x71   :  { %p1470_p9 = scmp.ne.s32.totalorder %s98_s5, %s1469_s23  ;;  %p1474_p10 = scmp.lt.s32.totalorder %s98_s5, %s98_s5 }
  0x72   :  { %p1475_p11 = scmp.lt.s32.totalorder %s1473_s6, %s1469_s23 }
  0x74   :  { %p1476_p12 = por %p1475_p11, %p1474_p10 }
  0x76   :  { %p1477_p13 = pnand %p1476_p12, %p1470_p9 }
  0x78   :  { %1480 = shalt.err (!%p1477_p13)
}
  0x79   :  { %100 = dma.hbm_to_vmem [thread:$0]  %s1879_s8, 16, %s98_s5, [#allocation12]  }
  0x7a   :  { %1503 = dma.done.wait [#allocation3], 256  }
  0x7b   :  { %1504 = vsyncadd [#allocation3], 4294967040 }
  0x7c   :  { %1505 = dma.done.wait [#allocation6], 816  }
  0x7d   :  { %1506 = vsyncadd [#allocation6], 4294966480 }
  0x7e   :  { %1507 = dma.done.wait [#allocation9], 1584  }
  0x7f   :  { %1508 = vsyncadd [#allocation9], 4294965712 }
  0x80   :  { %1509 = dma.done.wait [#allocation12], 32  }
  0x81   :  { %1510 = vsyncadd [#allocation12], 4294967264  ;;  %v127_v0 = vld [vmem:[#allocation2] sm:$0xff]  ;;  %v128_v1 = vld [vmem:[#allocation2 + $0x8] sm:$0xff]  ;;  %s1524_s8 = smov 96   ;;  %s1525_s18 = smov 32  }
  0x82   :  { %v1685_v2 = vunpack.c.l.bf16 %v127_v0  ;;  %v1687_v3 = vunpack.c.h.bf16 %v127_v0  ;;  %v1689_v4 = vunpack.c.l.bf16 %v128_v1  ;;  %v1691_v5 = vunpack.c.h.bf16 %v128_v1  ;;  %s1526_s24 = smov 64   ;;  %s1537_s28 = smov [#allocation14]  }
  0x83   :  { %vm151_vm0 = vcmask 261120   ;;  %vm302_vm1 = vcmask 7168   ;;  %vm305_vm2 = vcmask 15360   ;;  %vm308_vm3 = vcmask 23552   ;;  %s1068_s20 = sshll.u32 %s1537_s28, 4  ;;  %s1069_s20 = int_to_ptr.vmem [resolvable:$true] %s1068_s20 }
  0x84   :  { %v1193_v6 = vpack.i.bf16 %v1689_v4, %v1685_v2  ;;  %v1208_v7 = vpack.i.bf16 %v1691_v5, %v1687_v3  ;;  %v203_v8 = vmul.f32 %v1691_v5, %v1689_v4  ;;  %v202_v9 = vmul.f32 %v1687_v3, %v1685_v2  ;;  %s1481_s21 = scalar_lea.vmem %s1069_s20, 256  ;;  %p1486_p1 = scmp.lt.s32.totalorder %s1069_s20, %s1069_s20 }
  0x85   :  { %v286_v40 = vmul.f32 %v1687_v3, %v1687_v3  ;;  %v287_v41 = vmul.f32 %v1691_v5, %v1691_v5  ;;  %vm311_vm4 = vcmask 31744   ;;  %vm314_vm5 = vcmask 39936   ;;  %p1482_p0 = scmp.ne.s32.totalorder %s1069_s20, %s1481_s21  ;;  %p1487_p2 = scmp.lt.s32.totalorder %s1481_s21, %s1481_s21 }
  0x86   :  { %1194 = vrot.lane.b32.xlu0 %v1193_v6, %s1524_s8  ;;  %1204 = vrot.lane.b32.xlu1 %v1193_v6, %s1525_s18  ;;  %vm317_vm6 = vcmask 48128   ;;  %vm320_vm7 = vcmask 56320   ;;  %vm323_vm8 = vcmask 64512   ;;  %vm1536_vm9 = vmmov 0  }
  0x87   :  { %vm812_vm10 = vcmask 523264   ;;  %p1488_p3 = por %p1487_p2, %p1486_p1 }
  0x89   :  { %p1489_p4 = pnand %p1488_p3, %p1482_p0 }
  0x8a   :  { %1199 = vrot.lane.b32.xlu0 %v1193_v6, %s1526_s24  ;;  %1209 = vrot.lane.b32.xlu1 %v1208_v7, %s1524_s8 }
  0x8e   :  { %1214 = vrot.lane.b32.xlu0 %v1208_v7, %s1526_s24  ;;  %1219 = vrot.lane.b32.xlu1 %v1208_v7, %s1525_s18 }
  0x92   :  { %208 = vrot.lane.b32.xlu1 %v203_v8, %s1525_s18  ;;  %206 = vrot.lane.b32.xlu0 %v202_v9, %s1525_s18 }
  0xf8   :  { %v1195_v10 = vpop.permute.xlu0 %1194  ;;  %v1205_v11 = vpop.permute.xlu1 %1204 }
  0xf9   :  { %v1197_v12 = vunpack.i.h.bf16 %v1195_v10  ;;  %v1196_v13 = vunpack.i.l.bf16 %v1195_v10  ;;  %v1207_v19 = vunpack.i.h.bf16 %v1205_v11  ;;  %v1206_v20 = vunpack.i.l.bf16 %v1205_v11 }
  0xfb   :  { %v142_v14 = vmul.f32 %v1197_v12, %v1691_v5  ;;  %v141_v15 = vmul.f32 %v1196_v13, %v1687_v3  ;;  %v187_v24 = vmul.f32 %v1207_v19, %v1691_v5  ;;  %v186_v25 = vmul.f32 %v1206_v20, %v1687_v3 }
  0xfc   :  { %v1200_v16 = vpop.permute.xlu0 %1199  ;;  %v1210_v21 = vpop.permute.xlu1 %1209 }
  0xfd   :  { %v1202_v17 = vunpack.i.h.bf16 %v1200_v16  ;;  %v1201_v18 = vunpack.i.l.bf16 %v1200_v16  ;;  %147 = vrot.lane.b32.xlu1 %v142_v14, %s1525_s18  ;;  %145 = vrot.lane.b32.xlu0 %v141_v15, %s1525_s18  ;;  %v1212_v26 = vunpack.i.h.bf16 %v1210_v21  ;;  %v1211_v27 = vunpack.i.l.bf16 %v1210_v21 }
  0xff   :  { %v165_v22 = vmul.f32 %v1202_v17, %v1691_v5  ;;  %v164_v23 = vmul.f32 %v1201_v18, %v1687_v3  ;;  %v227_v29 = vmul.f32 %v1212_v26, %v1691_v5  ;;  %v226_v30 = vmul.f32 %v1211_v27, %v1687_v3 }
 0x100   :  { %v1215_v28 = vpop.permute.xlu0 %1214  ;;  %v1220_v33 = vpop.permute.xlu1 %1219 }
 0x101   :  { %170 = vrot.lane.b32.xlu1 %v165_v22, %s1525_s18  ;;  %168 = vrot.lane.b32.xlu0 %v164_v23, %s1525_s18  ;;  %v1217_v31 = vunpack.i.h.bf16 %v1215_v28  ;;  %v1216_v32 = vunpack.i.l.bf16 %v1215_v28  ;;  %v1222_v36 = vunpack.i.h.bf16 %v1220_v33  ;;  %v1221_v37 = vunpack.i.l.bf16 %v1220_v33 }
 0x103   :  { %v249_v34 = vmul.f32 %v1217_v31, %v1691_v5  ;;  %v248_v35 = vmul.f32 %v1216_v32, %v1687_v3  ;;  %v271_v38 = vmul.f32 %v1222_v36, %v1691_v5  ;;  %v270_v39 = vmul.f32 %v1221_v37, %v1687_v3 }
 0x104   :  { %v209_v42 = vpop.permute.xlu1 %208  ;;  %v207_v44 = vpop.permute.xlu0 %206 }
 0x105   :  { %192 = vrot.lane.b32.xlu1 %v187_v24, %s1525_s18  ;;  %190 = vrot.lane.b32.xlu0 %v186_v25, %s1525_s18  ;;  %v215_v43 = vsel %vm151_vm0, %v209_v42, 0.0  ;;  %v212_v45 = vsel %vm151_vm0, %v207_v44, 0.0 }
 0x109   :  { %232 = vrot.lane.b32.xlu1 %v227_v29, %s1525_s18  ;;  %230 = vrot.lane.b32.xlu0 %v226_v30, %s1525_s18 }
 0x10d   :  { %254 = vrot.lane.b32.xlu1 %v249_v34, %s1525_s18  ;;  %252 = vrot.lane.b32.xlu0 %v248_v35, %s1525_s18 }
 0x111   :  { %276 = vrot.lane.b32.xlu1 %v271_v38, %s1525_s18  ;;  %274 = vrot.lane.b32.xlu0 %v270_v39, %s1525_s18 }
 0x115   :  { %290 = vrot.lane.b32.xlu0 %v286_v40, %s1525_s18  ;;  %292 = vrot.lane.b32.xlu1 %v287_v41, %s1525_s18 }
 0x134   :  { %216 = vadd.xlane.f32.xlu0 %v215_v43 }
 0x139   :  { %213 = vadd.xlane.f32.xlu1 %v212_v45 }
 0x16f   :  { %v148_v46 = vpop.permute.xlu1 %147  ;;  %v146_v47 = vpop.permute.xlu0 %145 }
 0x170   :  { %v155_v48 = vsel %vm151_vm0, %v148_v46, 0.0  ;;  %v152_v49 = vsel %vm151_vm0, %v146_v47, 0.0 }
 0x171   :  { %156 = vadd.xlane.f32.xlu1 %v155_v48  ;;  %153 = vadd.xlane.f32.xlu0 %v152_v49 }
 0x173   :  { %v171_v50 = vpop.permute.xlu1 %170  ;;  %v169_v51 = vpop.permute.xlu0 %168 }
 0x174   :  { %v174_v52 = vsel %vm151_vm0, %v169_v51, 0.0  ;;  %v177_v55 = vsel %vm151_vm0, %v171_v50, 0.0 }
 0x175   :  { %175 = vadd.xlane.f32.xlu0 %v174_v52 }
 0x177   :  { %v193_v53 = vpop.permute.xlu1 %192  ;;  %v191_v54 = vpop.permute.xlu0 %190 }
 0x178   :  { %v196_v56 = vsel %vm151_vm0, %v191_v54, 0.0  ;;  %v199_v59 = vsel %vm151_vm0, %v193_v53, 0.0 }
 0x179   :  { %178 = vadd.xlane.f32.xlu0 %v177_v55  ;;  %197 = vadd.xlane.f32.xlu1 %v196_v56  ;;  %v1527_v56 = vmov 1  }
 0x17a   :  { %1223 = vset.pattern.permute.xlu1 %v1527_v56  ;;  %1224 = vset.pattern.permute.xlu0 %v1527_v56 }
 0x17b   :  { %v233_v57 = vpop.permute.xlu1 %232  ;;  %v231_v58 = vpop.permute.xlu0 %230 }
 0x17c   :  { %v236_v60 = vsel %vm151_vm0, %v231_v58, 0.0  ;;  %v239_v63 = vsel %vm151_vm0, %v233_v57, 0.0  ;;  %v1528_v57 = vmov 0  }
 0x17d   :  { %200 = vadd.xlane.f32.xlu0 %v199_v59  ;;  %237 = vadd.xlane.f32.xlu1 %v236_v60 }
 0x17e   :  { %630 = vmatprep.mubr.bf16.mxu1 %v1528_v57  ;;  %848 = vmatprep.mubr.bf16.mxu0 %v1528_v57 }
 0x17f   :  { %v255_v61 = vpop.permute.xlu1 %254  ;;  %v253_v62 = vpop.permute.xlu0 %252 }
 0x180   :  { %v258_v0 = vsel %vm151_vm0, %v253_v62, 0.0  ;;  %v261_v7 = vsel %vm151_vm0, %v255_v61, 0.0 }
 0x181   :  { %240 = vadd.xlane.f32.xlu0 %v239_v63  ;;  %259 = vadd.xlane.f32.xlu1 %v258_v0  ;;  %v1529_v0 = vmov 2  }
 0x183   :  { %v277_v1 = vpop.permute.xlu1 %276  ;;  %v275_v6 = vpop.permute.xlu0 %274 }
 0x184   :  { %v280_v8 = vsel %vm151_vm0, %v275_v6, 0.0  ;;  %v283_v11 = vsel %vm151_vm0, %v277_v1, 0.0  ;;  %v1530_v1 = vmov 7   ;;  %v1531_v6 = vmov 3  }
 0x185   :  { %262 = vadd.xlane.f32.xlu0 %v261_v7  ;;  %281 = vadd.xlane.f32.xlu1 %v280_v8  ;;  %v1532_v7 = vmov 5   ;;  %v1533_v8 = vmov 6  }
 0x187   :  { %v291_v9 = vpop.permute.xlu0 %290  ;;  %v293_v10 = vpop.permute.xlu1 %292 }
 0x188   :  { %v296_v12 = vsel %vm151_vm0, %v291_v9, 0.0  ;;  %v299_v13 = vsel %vm151_vm0, %v293_v10, 0.0  ;;  %v1534_v9 = vmov 4  }
 0x189   :  { %284 = vadd.xlane.f32.xlu0 %v283_v11  ;;  %297 = vadd.xlane.f32.xlu1 %v296_v12 }
 0x18d   :  { %300 = vadd.xlane.f32.xlu0 %v299_v13 }
 0x1c1   :  { %v217_v14 = vpop.xlane.xlu0 %216 }
 0x1c6   :  { %v214_v15 = vpop.xlane.xlu1 %213 }
 0x1fe   :  { %v154_v16 = vpop.xlane.xlu0 %153  ;;  %v157_v17 = vpop.xlane.xlu1 %156 }
 0x202   :  { %v176_v18 = vpop.xlane.xlu0 %175 }
 0x203   :  { %v303_v25 = vsel %vm302_vm1, %v154_v16, %v176_v18 }
 0x206   :  { %v198_v19 = vpop.xlane.xlu1 %197  ;;  %v179_v20 = vpop.xlane.xlu0 %178 }
 0x207   :  { %v306_v26 = vsel %vm305_vm2, %v303_v25, %v198_v19  ;;  %v304_v29 = vsel %vm302_vm1, %v157_v17, %v179_v20 }
 0x208   :  { %v309_v30 = vsel %vm308_vm3, %v306_v26, %v214_v15 }
 0x20a   :  { %v238_v21 = vpop.xlane.xlu1 %237  ;;  %v201_v22 = vpop.xlane.xlu0 %200 }
 0x20b   :  { %v312_v31 = vsel %vm311_vm4, %v309_v30, %v238_v21  ;;  %v307_v32 = vsel %vm305_vm2, %v304_v29, %v201_v22 }
 0x20c   :  { %v310_v37 = vsel %vm308_vm3, %v307_v32, %v217_v14 }
 0x20e   :  { %v260_v23 = vpop.xlane.xlu1 %259  ;;  %v241_v24 = vpop.xlane.xlu0 %240 }
 0x20f   :  { %v315_v33 = vsel %vm314_vm5, %v312_v31, %v260_v23  ;;  %v313_v39 = vsel %vm311_vm4, %v310_v37, %v241_v24 }
 0x212   :  { %v282_v27 = vpop.xlane.xlu1 %281  ;;  %v263_v28 = vpop.xlane.xlu0 %262 }
 0x213   :  { %v318_v34 = vsel %vm317_vm6, %v315_v33, %v282_v27  ;;  %v316_v41 = vsel %vm314_vm5, %v313_v39, %v263_v28 }
 0x216   :  { %v298_v35 = vpop.xlane.xlu1 %297  ;;  %v285_v36 = vpop.xlane.xlu0 %284 }
 0x217   :  { %v321_v38 = vsel %vm320_vm7, %v318_v34, %v298_v35  ;;  %v319_v42 = vsel %vm317_vm6, %v316_v41, %v285_v36 }
 0x218   :  { %v324_v40 = vsel %vm323_vm8, %v321_v38, -inf }
 0x219   :  { %325 = vmax.xlane.f32.xlu1 %v324_v40 }
 0x21a   :  { %v301_v43 = vpop.xlane.xlu0 %300 }
 0x21b   :  { %v322_v44 = vsel %vm320_vm7, %v319_v42, %v301_v43 }
 0x21c   :  { %v327_v45 = vsel %vm323_vm8, %v322_v44, -inf }
 0x21d   :  { %328 = vmax.xlane.f32.xlu0 %v327_v45 }
 0x2a6   :  { %v326_v46 = vpop.xlane.xlu1 %325 }
 0x2a7   :  { %v330_v47 = vsub.f32 %v321_v38, %v326_v46 }
 0x2a9   :  { %v332_v48 = vmul.f32 1.442695, %v330_v47 }
 0x2aa   :  { %v329_v49 = vpop.xlane.xlu0 %328 }
 0x2ab   :  { %1263 = vpow2.f32 %v332_v48  ;;  %v331_v50 = vsub.f32 %v322_v44, %v329_v49 }
 0x2ad   :  { %v334_v51 = vmul.f32 1.442695, %v331_v50 }
 0x2af   :  { %1265 = vpow2.f32 %v334_v51 }
 0x2b5   :  { %v1264_v52 = vpop.eup %1263 }
 0x2b6   :  { %v336_v53 = vsel %vm323_vm8, %v1264_v52, 0.0 }
 0x2b7   :  { %337 = vadd.xlane.f32.xlu1 %v336_v53 }
 0x2b9   :  { %v1266_v54 = vpop.eup %1265 }
 0x2ba   :  { %v339_v55 = vsel %vm323_vm8, %v1266_v54, 0.0 }
 0x2bb   :  { %340 = vadd.xlane.f32.xlu0 %v339_v55 }
 0x344   :  { %v338_v58 = vpop.xlane.xlu1 %337 }
 0x345   :  { %1267 = vrcp.f32 %v338_v58 }
 0x348   :  { %v341_v59 = vpop.xlane.xlu0 %340 }
 0x349   :  { %1269 = vrcp.f32 %v341_v59 }
 0x34f   :  { %v1268_v60 = vpop.eup %1267 }
 0x350   :  { %v344_v61 = vmul.f32 %v1268_v60, %v1264_v52 }
 0x352   :  { %361 = vperm.xlu1 %1223, %v344_v61  }
 0x353   :  { %v1270_v62 = vpop.eup %1269 }
 0x354   :  { %v345_v63 = vmul.f32 %v1270_v62, %v1266_v54 }
 0x356   :  { %1225 = vset.pattern.permute.xlu1 %v1529_v0  ;;  %365 = vperm.xlu0 %1224, %v345_v63  }
 0x357   :  { %381 = vperm.xlu1 %1225, %v344_v61  }
 0x35a   :  { %1229 = vset.pattern.permute.xlu0 %v1530_v1 }
 0x35b   :  { %385 = vperm.xlu1 %1225, %v345_v63   ;;  %473 = vperm.xlu0 %1229, %v344_v61  }
 0x35f   :  { %1226 = vset.pattern.permute.xlu1 %v1531_v6  ;;  %1232 = vset.pattern.permute.xlu0 %v1528_v57 }
 0x360   :  { %401 = vperm.xlu1 %1226, %v344_v61   ;;  %353 = vperm.xlu0 %1232, %v345_v63  }
 0x364   :  { %405 = vperm.xlu1 %1226, %v345_v63   ;;  %1234 = vset.pattern.permute.xlu0 %v1530_v1 }
 0x368   :  { %1227 = vset.pattern.permute.xlu1 %v1532_v7 }
 0x369   :  { %433 = vperm.xlu1 %1227, %v344_v61  }
 0x36d   :  { %437 = vperm.xlu1 %1227, %v345_v63  }
 0x371   :  { %1228 = vset.pattern.permute.xlu1 %v1533_v8 }
 0x372   :  { %453 = vperm.xlu1 %1228, %v344_v61  }
 0x376   :  { %457 = vperm.xlu1 %1228, %v345_v63  }
 0x37a   :  { %1230 = vset.pattern.permute.xlu1 %v1530_v1 }
 0x37b   :  { %477 = vperm.xlu1 %1230, %v345_v63  }
 0x37f   :  { %1231 = vset.pattern.permute.xlu1 %v1528_v57 }
 0x380   :  { %348 = vperm.xlu1 %1231, %v344_v61  }
 0x384   :  { %1233 = vset.pattern.permute.xlu1 %v1534_v9 }
 0x385   :  { %421 = vperm.xlu1 %1233, %v344_v61  }
 0x389   :  { %425 = vperm.xlu1 %1233, %v345_v63  }
 0x3d1   :  { %v362_v10 = vpop.permute.xlu1 %361 }
 0x3d2   :  { %v368_v11 = vmul.f32 %v362_v10, %v1685_v2 }
 0x3d4   :  { %372 = vrot.lane.b32.xlu0 %v368_v11, %s1524_s8 }
 0x3d5   :  { %v366_v12 = vpop.permute.xlu0 %365 }
 0x3d6   :  { %v369_v13 = vmul.f32 %v366_v12, %v1689_v4  ;;  %v382_v14 = vpop.permute.xlu1 %381 }
 0x3d7   :  { %v388_v15 = vmul.f32 %v382_v14, %v1685_v2 }
 0x3d8   :  { %374 = vrot.lane.b32.xlu1 %v369_v13, %s1524_s8 }
 0x3d9   :  { %392 = vrot.lane.b32.xlu0 %v388_v15, %s1526_s24 }
 0x3da   :  { %v386_v16 = vpop.permute.xlu1 %385  ;;  %v474_v28 = vpop.permute.xlu0 %473 }
 0x3db   :  { %v389_v17 = vmul.f32 %v386_v16, %v1689_v4  ;;  %v480_v30 = vmul.f32 %v474_v28, %v1687_v3  ;;  %v1235_v16 = vld [vmem:[#allocation5 + $0x4] ss:$12 sps:$4 sm:$0xff]  }
 0x3dc   :  { %598 = vmatprep.subr.bf16.mxu1 %v1235_v16 }
 0x3dd   :  { %394 = vrot.lane.b32.xlu1 %v389_v17, %s1526_s24  ;;  %v1237_v17 = vld [vmem:[#allocation5] ss:$12 sps:$4 sm:$0xff]  }
 0x3de   :  { %599 = vmatpush1.bf16.msra.mxu1 %v1237_v17 }
 0x3df   :  { %v402_v18 = vpop.permute.xlu1 %401  ;;  %v354_v36 = vpop.permute.xlu0 %353 }
 0x3e0   :  { %v408_v19 = vmul.f32 %v402_v18, %v1685_v2  ;;  %v357_v46 = vmul.f32 %v354_v36, %v1689_v4  ;;  %v1238_v18 = vld [vmem:[#allocation5 + $0x1c] ss:$12 sps:$4 sm:$0xff]  }
 0x3e1   :  { %600 = vmatprep.subr.bf16.mxu1 %v1238_v18 }
 0x3e2   :  { %412 = vrot.lane.b32.xlu0 %v408_v19, %s1525_s18  ;;  %v1240_v19 = vld [vmem:[#allocation5 + $0x18] ss:$12 sps:$4 sm:$0xff]  }
 0x3e3   :  { %v406_v20 = vpop.permute.xlu1 %405  ;;  %601 = vmatpush1.bf16.msra.mxu1 %v1240_v19 }
 0x3e4   :  { %v409_v21 = vmul.f32 %v406_v20, %v1689_v4  ;;  %v1535_v20 = vmov 0.0  }
 0x3e5   :  { %1136 = vmatprep.subr.bf16.mxu1 %v1535_v20 }
 0x3e6   :  { %414 = vrot.lane.b32.xlu1 %v409_v21, %s1525_s18 }
 0x3e8   :  { %v434_v22 = vpop.permute.xlu1 %433 }
 0x3e9   :  { %v440_v23 = vmul.f32 %v434_v22, %v1687_v3 }
 0x3eb   :  { %444 = vrot.lane.b32.xlu0 %v440_v23, %s1524_s8 }
 0x3ec   :  { %v438_v24 = vpop.permute.xlu1 %437 }
 0x3ed   :  { %v441_v25 = vmul.f32 %v438_v24, %v1691_v5 }
 0x3ef   :  { %446 = vrot.lane.b32.xlu1 %v441_v25, %s1524_s8 }
 0x3f1   :  { %v454_v26 = vpop.permute.xlu1 %453 }
 0x3f2   :  { %v460_v27 = vmul.f32 %v454_v26, %v1687_v3 }
 0x3f4   :  { %464 = vrot.lane.b32.xlu0 %v460_v27, %s1526_s24 }
 0x3f5   :  { %v458_v29 = vpop.permute.xlu1 %457 }
 0x3f6   :  { %v461_v31 = vmul.f32 %v458_v29, %v1691_v5  ;;  %v1083_v29 = vld [vmem:[%s1872_s1] ss:$0 sm:$0xff] }
 0x3f8   :  { %466 = vrot.lane.b32.xlu1 %v461_v31, %s1526_s24  ;;  %484 = vrot.lane.b32.xlu0 %v480_v30, %s1525_s18 }
 0x3fa   :  { %v478_v32 = vpop.permute.xlu1 %477 }
 0x3fb   :  { %v481_v33 = vmul.f32 %v478_v32, %v1691_v5 }
 0x3fd   :  { %486 = vrot.lane.b32.xlu1 %v481_v33, %s1525_s18  ;;  %v1084_v33 = vld [vmem:[%s1873_s2] ss:$0 sm:$0xff] }
 0x3ff   :  { %v349_v34 = vpop.permute.xlu1 %348 }
 0x400   :  { %v356_v41 = vmul.f32 %v349_v34, %v1685_v2 }
 0x404   :  { %v422_v35 = vpop.permute.xlu1 %421 }
 0x405   :  { %v428_v51 = vmul.f32 %v422_v35, %v1687_v3 }
 0x408   :  { %v426_v37 = vpop.permute.xlu1 %425 }
 0x409   :  { %v429_v2 = vmul.f32 %v426_v37, %v1691_v5  ;;  %v1241_v37 = vld [vmem:[#allocation5 + $0x8] ss:$12 sps:$4 sm:$0xff]  }
 0x446   :  { %v373_v38 = vpop.permute.xlu0 %372 }
 0x447   :  { %v378_v42 = vadd.f32 %v373_v38, %v356_v41  ;;  %v1245_v41 = vld [vmem:[#allocation8] ss:$12 sps:$4 sm:$0xff]  }
 0x44a   :  { %v375_v39 = vpop.permute.xlu1 %374 }
 0x44b   :  { %v393_v40 = vpop.permute.xlu0 %392  ;;  %v379_v48 = vadd.f32 %v375_v39, %v357_v46  ;;  %v1242_v39 = vld [vmem:[#allocation5 + $0x20] ss:$12 sps:$4 sm:$0xff]   ;;  %v1251_v46 = vld [vmem:[#allocation8 + $0x34] ss:$12 sps:$4 sm:$0xff]  }
 0x44c   :  { %v398_v45 = vadd.f32 %v393_v40, %v378_v42  ;;  %v1243_v40 = vld [vmem:[#allocation8 + $0x4] ss:$12 sps:$4 sm:$0xff]   ;;  %v1246_v42 = vld [vmem:[#allocation8 + $0x8] ss:$12 sps:$4 sm:$0xff]  }
 0x44d   :  { %816 = vmatprep.subr.bf16.mxu0 %v1243_v40 }
 0x44e   :  { %817 = vmatpush1.bf16.msra.mxu0 %v1245_v41 }
 0x44f   :  { %v395_v43 = vpop.permute.xlu1 %394 }
 0x450   :  { %v399_v52 = vadd.f32 %v395_v43, %v379_v48  ;;  %v1247_v43 = vld [vmem:[#allocation8 + $0x1c] ss:$12 sps:$4 sm:$0xff]   ;;  %v1254_v48 = vld [vmem:[#allocation8 + $0x38] ss:$12 sps:$4 sm:$0xff]  }
 0x451   :  { %818 = vmatprep.subr.bf16.mxu0 %v1247_v43 }
 0x454   :  { %v413_v44 = vpop.permute.xlu0 %412 }
 0x455   :  { %v418_v47 = vadd.f32 %v413_v44, %v398_v45  ;;  %v1249_v44 = vld [vmem:[#allocation8 + $0x18] ss:$12 sps:$4 sm:$0xff]   ;;  %v1250_v45 = vld [vmem:[#allocation8 + $0x20] ss:$12 sps:$4 sm:$0xff]  }
 0x456   :  { %819 = vmatpush1.bf16.msra.mxu0 %v1249_v44 }
 0x457   :  { %v430_v53 = vadd.f32 %v428_v51, %v418_v47  ;;  %v1253_v47 = vld [vmem:[#allocation8 + $0x30] ss:$12 sps:$4 sm:$0xff]   ;;  %820 = vmatprep.subr.bf16.mxu0 %v1251_v46 }
 0x458   :  { %v415_v49 = vpop.permute.xlu1 %414  ;;  %v1258_v51 = vld [vmem:[#allocation8 + $0x50] ss:$12 sps:$4 sm:$0xff]  }
 0x459   :  { %v419_v54 = vadd.f32 %v415_v49, %v399_v52  ;;  %v1255_v49 = vld [vmem:[#allocation8 + $0x4c] ss:$12 sps:$4 sm:$0xff]   ;;  %v548_v52 = vlaneseq }
 0x45a   :  { %821 = vmatpush1.bf16.msra.mxu0 %v1253_v47 }
 0x45b   :  { %v431_v59 = vadd.f32 %v429_v2, %v419_v54  ;;  %822 = vmatprep.subr.bf16.mxu0 %v1255_v49 }
 0x45d   :  { %v445_v50 = vpop.permute.xlu0 %444 }
 0x45e   :  { %v450_v57 = vadd.f32 %v445_v50, %v430_v53  ;;  %v1257_v50 = vld [vmem:[#allocation8 + $0x48] ss:$12 sps:$4 sm:$0xff]   ;;  %v1816_v53 = vshrl.u32 %v548_v52, 7 }
 0x45f   :  { %823 = vmatpush1.bf16.msra.mxu0 %v1257_v50 }
 0x460   :  { %1156 = vmatprep.subr.bf16.mxu0 %v1535_v20  ;;  %v550_v54 = vsub.s32 0, %v1816_v53 }
 0x461   :  { %v447_v55 = vpop.permute.xlu1 %446 }
 0x462   :  { %v451_v4 = vadd.f32 %v447_v55, %v431_v59  ;;  %v546_v55 = vld [vmem:[#allocation7] sm:$0x7]  ;;  %v558_v59 = vsub.s32 2, %v1816_v53 }
 0x466   :  { %v465_v56 = vpop.permute.xlu0 %464 }
 0x467   :  { %v470_v58 = vadd.f32 %v465_v56, %v450_v57  ;;  %v551_v56 = vrot.slane %v546_v55, %v550_v54 }
 0x46a   :  { %v467_v60 = vpop.permute.xlu1 %466  ;;  %v485_v61 = vpop.permute.xlu0 %484 }
 0x46b   :  { %v490_v62 = vadd.f32 %v485_v61, %v470_v58  ;;  %v471_v0 = vadd.f32 %v467_v60, %v451_v4 }
 0x46d   :  { %v494_v63 = vsel %vm151_vm0, %v490_v62, 0.0 }
 0x46e   :  { %495 = vadd.xlane.f32.xlu0 %v494_v63  ;;  %v554_v63 = vsub.s32 1, %v1816_v53 }
 0x46f   :  { %v487_v1 = vpop.permute.xlu1 %486 }
 0x470   :  { %v491_v3 = vadd.f32 %v487_v1, %v471_v0  ;;  %v559_v1 = vrot.slane %v546_v55, %v558_v59 }
 0x472   :  { %v497_v6 = vsel %vm151_vm0, %v491_v3, 0.0 }
 0x473   :  { %498 = vadd.xlane.f32.xlu1 %v497_v6  ;;  %v555_v6 = vrot.slane %v546_v55, %v554_v63 }
 0x4fb   :  { %v496_v7 = vpop.xlane.xlu0 %495 }
 0x4fc   :  { %v501_v8 = vmul.f32 0.03125, %v496_v7 }
 0x4fe   :  { %v503_v9 = vsub.f32 %v490_v62, %v501_v8 }
 0x500   :  { %v499_v10 = vpop.xlane.xlu1 %498  ;;  %v505_v5 = vmul.f32 %v503_v9, %v503_v9 }
 0x501   :  { %v502_v11 = vmul.f32 0.03125, %v499_v10 }
 0x502   :  { %v507_v12 = vsel %vm151_vm0, %v505_v5, 0.0 }
 0x503   :  { %v504_v13 = vsub.f32 %v491_v3, %v502_v11  ;;  %508 = vadd.xlane.f32.xlu0 %v507_v12 }
 0x505   :  { %v506_v14 = vmul.f32 %v504_v13, %v504_v13 }
 0x507   :  { %v510_v15 = vsel %vm151_vm0, %v506_v14, 0.0 }
 0x508   :  { %511 = vadd.xlane.f32.xlu0 %v510_v15 }
 0x590   :  { %v509_v21 = vpop.xlane.xlu0 %508 }
 0x591   :  { %v513_v22 = vmul.f32 0.03125, %v509_v21 }
 0x593   :  { %v515_v23 = vadd.f32 1e-05, %v513_v22 }
 0x595   :  { %1271 = vrsqrt.f32 %v515_v23  ;;  %v512_v24 = vpop.xlane.xlu0 %511 }
 0x596   :  { %v514_v25 = vmul.f32 0.03125, %v512_v24 }
 0x598   :  { %v516_v26 = vadd.f32 1e-05, %v514_v25 }
 0x59a   :  { %1273 = vrsqrt.f32 %v516_v26 }
 0x59f   :  { %v1272_v27 = vpop.eup %1271 }
 0x5a0   :  { %v519_v28 = vmul.f32 %v1272_v27, %v503_v9 }
 0x5a2   :  { %v527_v32 = vmul.f32 %v1083_v29, %v519_v28 }
 0x5a4   :  { %v1274_v30 = vpop.eup %1273  ;;  %v535_v35 = vadd.f32 %v1084_v33, %v527_v32 }
 0x5a5   :  { %v520_v31 = vmul.f32 %v1274_v30, %v504_v13 }
 0x5a7   :  { %v528_v34 = vmul.f32 %v1083_v29, %v520_v31 }
 0x5a9   :  { %v536_v36 = vadd.f32 %v1084_v33, %v528_v34 }
 0x5ab   :  { %v537_v38 = vpack.c.bf16 %v536_v36, %v535_v35 }
 0x5ad   :  { %1091 = vmatmul.mubr.msk.bf16.vlgmr.msra.gmra.mrb[0].mxu1 %vm151_vm0, %v537_v38 }
 0x5ae   :  { %1137 = vmatpush3.bf16.msra.mxu1 %v1241_v37  ;;  %1140 = vmatprep.mubr.msk.bf16.mxu1 %vm1536_vm9, %v1535_v20  ;;  %v731_v37 = vld [vmem:[#allocation10] sm:$0x7] }
 0x5af   :  { %1138 = vmatprep.subr.bf16.mxu1 %v1535_v20 }
 0x5b2   :  { %1139 = vmatpush3.bf16.msra.mxu1 %v1242_v39 }
 0x5b3   :  { %1144 = vmatprep.subr.bf16.mxu1 %v1535_v20 }
 0x5b5   :  { %1141 = vmatmul.mubr.msk.bf16.vlgmr.msra.gmra.mrb[4].mxu1 %vm151_vm0, %v537_v38  ;;  %v736_v38 = vrot.slane %v731_v37, %v550_v54  ;;  %v740_v54 = vrot.slane %v731_v37, %v554_v63 }
 0x5b6   :  { %1152 = vmatprep.mubr.msk.bf16.mxu1 %vm1536_vm9, %v1535_v20  ;;  %1145 = vmatpush3.bf16.msra.mxu1 %v1246_v42  ;;  %v744_v42 = vrot.slane %v731_v37, %v558_v59 }
 0x5b7   :  { %1146 = vmatprep.subr.bf16.mxu1 %v1535_v20 }
 0x5ba   :  { %1147 = vmatpush3.bf16.msra.mxu1 %v1250_v45 }
 0x5bb   :  { %1148 = vmatprep.subr.bf16.mxu1 %v1535_v20 }
 0x5be   :  { %1149 = vmatpush3.bf16.msra.mxu1 %v1254_v48 }
 0x5bf   :  { %1150 = vmatprep.subr.bf16.mxu1 %v1535_v20 }
 0x5c2   :  { %1151 = vmatpush3.bf16.msra.mxu1 %v1258_v51 }
 0x680   :  { %v632_v57 = vpop.f32.mrb[0].mxu1 }
 0x681   :  { %v633_v2 = vadd.f32 %v632_v57, %v551_v56  ;;  %v634_v58 = vpop.f32.mrb[1].mxu1 }
 0x682   :  { %v636_v60 = vpop.f32.mrb[2].mxu1  ;;  %v635_v12 = vadd.f32 %v634_v58, %v555_v6 }
 0x683   :  { %v1093_v61 = vmul.f32 -1.442695, %v633_v2  ;;  %v637_v62 = vadd.f32 %v636_v60, %v551_v56  ;;  %v638_v4 = vpop.f32.mrb[3].mxu1 }
 0x684   :  { %v639_v15 = vadd.f32 %v638_v4, %v555_v6 }
 0x685   :  { %1275 = vpow2.f32 %v1093_v61  ;;  %v1094_v0 = vmul.f32 -1.442695, %v637_v62 }
 0x687   :  { %1277 = vpow2.f32 %v1094_v0 }
 0x688   :  { %v675_v3 = vpop.f32.mrb[4].mxu1 }
 0x689   :  { %v676_v7 = vadd.f32 %v675_v3, %v559_v1  ;;  %v1142_v8 = vpop.f32.mrb[5].mxu1 }
 0x68a   :  { %v678_v9 = vpop.f32.mrb[6].mxu1 }
 0x68b   :  { %v1095_v10 = vmul.f32 -1.442695, %v676_v7  ;;  %v679_v5 = vadd.f32 %v678_v9, %v559_v1  ;;  %v1143_v11 = vpop.f32.mrb[7].mxu1 }
 0x68d   :  { %1279 = vpow2.f32 %v1095_v10  ;;  %v1096_v13 = vmul.f32 -1.442695, %v679_v5 }
 0x68f   :  { %v1276_v14 = vpop.eup %1275  ;;  %1281 = vpow2.f32 %v1096_v13 }
 0x690   :  { %v688_v16 = vadd.f32 1.0, %v1276_v14  ;;  %1283 = vtanh.f32 %v635_v12 }
 0x691   :  { %v1278_v17 = vpop.eup %1277 }
 0x692   :  { %1285 = vrcp.f32 %v688_v16  ;;  %v689_v18 = vadd.f32 1.0, %v1278_v17 }
 0x693   :  { %1287 = vtanh.f32 %v639_v15 }
 0x694   :  { %1289 = vrcp.f32 %v689_v18 }
 0x697   :  { %v1280_v19 = vpop.eup %1279 }
 0x698   :  { %v702_v22 = vadd.f32 1.0, %v1280_v19 }
 0x699   :  { %v1282_v21 = vpop.eup %1281 }
 0x69a   :  { %v1284_v23 = vpop.eup %1283  ;;  %v703_v25 = vadd.f32 1.0, %v1282_v21  ;;  %1291 = vrcp.f32 %v702_v22 }
 0x69c   :  { %v1286_v24 = vpop.eup %1285 }
 0x69d   :  { %v1288_v26 = vpop.eup %1287  ;;  %v708_v27 = vmul.f32 %v1286_v24, %v1284_v23 }
 0x69e   :  { %v1290_v28 = vpop.eup %1289 }
 0x69f   :  { %1293 = vtanh.f32 %v708_v27  ;;  %v709_v29 = vmul.f32 %v1290_v28, %v1288_v26  ;;  %v1259_v28 = vld [vmem:[%s1880_s9] sm:$0xff]  }
 0x6a0   :  { %1295 = vrcp.f32 %v703_v25 }
 0x6a1   :  { %1297 = vtanh.f32 %v709_v29  ;;  %v1260_v29 = vld [vmem:[%s1880_s9 + $0x8] sm:$0xff]  }
 0x6a4   :  { %v1292_v30 = vpop.eup %1291 }
 0x6a9   :  { %v1294_v31 = vpop.eup %1293 }
 0x6aa   :  { %v1296_v32 = vpop.eup %1295  ;;  %v712_v33 = vmul.f32 %v1294_v31, %v1292_v30  ;;  %v1261_v30 = vld [vmem:[%s1880_s9 + $0x10] sm:$0xff]   ;;  %v1262_v31 = vld [vmem:[%s1880_s9 + $0x18] sm:$0xff]  }
 0x6ab   :  { %v1298_v34 = vpop.eup %1297 }
 0x6ac   :  { %v713_v35 = vmul.f32 %v1298_v34, %v1296_v32 }
 0x6ae   :  { %v714_v36 = vpack.c.bf16 %v713_v35, %v712_v33 }
 0x6b0   :  { %1109 = vmatmul.mubr.msk.bf16.vlgmr.msra.gmra.mrb[0].mxu0 %vm812_vm10, %v714_v36  ;;  %1153 = vmatmul.mubr.msk.bf16.vlgmr.msra.gmra.mrb[8].mxu1 %vm812_vm10, %v714_v36 }
 0x6b1   :  { %1164 = vmatprep.mubr.msk.bf16.mxu0 %vm1536_vm9, %v1535_v20  ;;  %1157 = vmatpush3.bf16.msra.mxu0 %v1259_v28 }
 0x6b2   :  { %1158 = vmatprep.subr.bf16.mxu0 %v1535_v20 }
 0x6b5   :  { %1159 = vmatpush3.bf16.msra.mxu0 %v1260_v29 }
 0x6b6   :  { %1160 = vmatprep.subr.bf16.mxu0 %v1535_v20 }
 0x6b9   :  { %1161 = vmatpush3.bf16.msra.mxu0 %v1261_v30 }
 0x6ba   :  { %1162 = vmatprep.subr.bf16.mxu0 %v1535_v20 }
 0x6bd   :  { %1163 = vmatpush3.bf16.msra.mxu0 %v1262_v31 }
 0x783   :  { %v850_v39 = vpop.f32.mrb[0].mxu0  ;;  %v893_v40 = vpop.f32.mrb[8].mxu1 }
 0x784   :  { %v851_v41 = vadd.f32 %v850_v39, %v736_v38  ;;  %v852_v43 = vpop.f32.mrb[1].mxu0  ;;  %v1154_v44 = vpop.f32.mrb[9].mxu1  ;;  %v894_v51 = vadd.f32 %v893_v40, %v744_v42  ;;  %v1115_v39 = vld [vmem:[#allocation11] ss:$0 sm:$0xff] }
 0x785   :  { %v854_v45 = vpop.f32.mrb[2].mxu0  ;;  %v896_v46 = vpop.f32.mrb[10].mxu1  ;;  %v853_v2 = vadd.f32 %v852_v43, %v740_v54  ;;  %v1116_v44 = vld [vmem:[#allocation13] ss:$0 sm:$0xff] }
 0x786   :  { %v1111_v47 = vmul.f32 -1.442695, %v851_v41  ;;  %v855_v48 = vadd.f32 %v854_v45, %v736_v38  ;;  %v856_v49 = vpop.f32.mrb[3].mxu0  ;;  %v1155_v50 = vpop.f32.mrb[11].mxu1  ;;  %v897_v55 = vadd.f32 %v896_v46, %v744_v42  ;;  %v1113_v56 = vmul.f32 -1.442695, %v894_v51 }
 0x787   :  { %v857_v59 = vadd.f32 %v856_v49, %v740_v54 }
 0x788   :  { %1299 = vpow2.f32 %v1111_v47  ;;  %v1112_v52 = vmul.f32 -1.442695, %v855_v48  ;;  %v1114_v57 = vmul.f32 -1.442695, %v897_v55  ;;  %v1117_v48 = vld [vmem:[%s1881_s10] ss:$0 sm:$0xff] }
 0x78a   :  { %1301 = vpow2.f32 %v1112_v52 }
 0x78b   :  { %1303 = vpow2.f32 %v1113_v56 }
 0x78c   :  { %1305 = vpow2.f32 %v1114_v57 }
 0x78d   :  { %1307 = vtanh.f32 %v853_v2 }
 0x792   :  { %v1300_v58 = vpop.eup %1299 }
 0x793   :  { %v906_v60 = vadd.f32 1.0, %v1300_v58 }
 0x794   :  { %v1302_v61 = vpop.eup %1301 }
 0x795   :  { %1309 = vrcp.f32 %v906_v60  ;;  %v907_v62 = vadd.f32 1.0, %v1302_v61  ;;  %v1304_v4 = vpop.eup %1303 }
 0x796   :  { %1311 = vtanh.f32 %v857_v59  ;;  %v1306_v0 = vpop.eup %1305  ;;  %v920_v1 = vadd.f32 1.0, %v1304_v4 }
 0x797   :  { %1313 = vrcp.f32 %v907_v62  ;;  %v1308_v3 = vpop.eup %1307  ;;  %v921_v53 = vadd.f32 1.0, %v1306_v0 }
 0x798   :  { %1315 = vrcp.f32 %v920_v1 }
 0x79f   :  { %v1310_v6 = vpop.eup %1309 }
 0x7a0   :  { %v1312_v63 = vpop.eup %1311  ;;  %v926_v7 = vmul.f32 %v1310_v6, %v1308_v3 }
 0x7a1   :  { %v1314_v8 = vpop.eup %1313 }
 0x7a2   :  { %1317 = vtanh.f32 %v926_v7  ;;  %v927_v9 = vmul.f32 %v1314_v8, %v1312_v63  ;;  %v1316_v10 = vpop.eup %1315 }
 0x7a3   :  { %1319 = vrcp.f32 %v921_v53 }
 0x7a4   :  { %1321 = vtanh.f32 %v927_v9 }
 0x7ac   :  { %v1318_v5 = vpop.eup %1317 }
 0x7ad   :  { %v1320_v11 = vpop.eup %1319  ;;  %v930_v12 = vmul.f32 %v1318_v5, %v1316_v10 }
 0x7ae   :  { %v1322_v13 = vpop.eup %1321 }
 0x7af   :  { %v934_v14 = vsel %vm812_vm10, %v930_v12, 0.0  ;;  %v931_v15 = vmul.f32 %v1322_v13, %v1320_v11 }
 0x7b0   :  { %935 = vadd.xlane.f32.xlu1 %v934_v14 }
 0x7b1   :  { %v937_v16 = vsel %vm812_vm10, %v931_v15, 0.0 }
 0x7b2   :  { %938 = vadd.xlane.f32.xlu0 %v937_v16 }
 0x83d   :  { %v936_v17 = vpop.xlane.xlu1 %935 }
 0x83e   :  { %v941_v18 = vmul.f32 0.015625, %v936_v17 }
 0x83f   :  { %v939_v19 = vpop.xlane.xlu0 %938 }
 0x840   :  { %v943_v21 = vsub.f32 %v930_v12, %v941_v18  ;;  %v942_v22 = vmul.f32 0.015625, %v939_v19 }
 0x842   :  { %v944_v23 = vsub.f32 %v931_v15, %v942_v22  ;;  %v945_v24 = vmul.f32 %v943_v21, %v943_v21 }
 0x844   :  { %v947_v25 = vsel %vm812_vm10, %v945_v24, 0.0  ;;  %v946_v26 = vmul.f32 %v944_v23, %v944_v23 }
 0x845   :  { %948 = vadd.xlane.f32.xlu1 %v947_v25 }
 0x846   :  { %v950_v27 = vsel %vm812_vm10, %v946_v26, 0.0 }
 0x847   :  { %951 = vadd.xlane.f32.xlu0 %v950_v27 }
 0x8d2   :  { %v949_v32 = vpop.xlane.xlu1 %948 }
 0x8d3   :  { %v953_v33 = vmul.f32 0.015625, %v949_v32 }
 0x8d4   :  { %v952_v34 = vpop.xlane.xlu0 %951 }
 0x8d5   :  { %v955_v35 = vadd.f32 1e-05, %v953_v33  ;;  %v954_v36 = vmul.f32 0.015625, %v952_v34 }
 0x8d7   :  { %1323 = vrsqrt.f32 %v955_v35  ;;  %v956_v37 = vadd.f32 1e-05, %v954_v36 }
 0x8d9   :  { %1325 = vrsqrt.f32 %v956_v37 }
 0x8e1   :  { %v1324_v38 = vpop.eup %1323 }
 0x8e2   :  { %v959_v40 = vmul.f32 %v1324_v38, %v943_v21 }
 0x8e3   :  { %v1326_v41 = vpop.eup %1325 }
 0x8e4   :  { %v967_v42 = vmul.f32 %v1115_v39, %v959_v40  ;;  %v960_v43 = vmul.f32 %v1326_v41, %v944_v23 }
 0x8e6   :  { %v968_v45 = vmul.f32 %v1115_v39, %v960_v43  ;;  %v975_v46 = vadd.f32 %v1116_v44, %v967_v42 }
 0x8e8   :  { %v976_v47 = vadd.f32 %v1116_v44, %v968_v45 }
 0x8ea   :  { %v977_v20 = vpack.c.bf16 %v976_v47, %v975_v46 }
 0x8ec   :  { %1165 = vmatmul.mubr.msk.bf16.vlgmr.msra.gmra.mrb[4].mxu0 %vm812_vm10, %v977_v20 }
 0x9bf   :  { %v1054_v49 = vpop.f32.mrb[4].mxu0 }
 0x9c0   :  { %v1055_v50 = vadd.f32 %v1117_v48, %v1054_v49  ;;  %v1166_v51 = vpop.f32.mrb[5].mxu0 }
 0x9c1   :  { %v1057_v52 = vpop.f32.mrb[6].mxu0 }
 0x9c2   :  { %1061 = vst [vmem:[#allocation14] sm:$0xff] %v1055_v50  ;;  %v1058_v55 = vadd.f32 %v1117_v48, %v1057_v52  ;;  %v1167_v56 = vpop.f32.mrb[7].mxu0 }
 0x9c4   :  { %1062 = vst [vmem:[#allocation14 + $0x8] sm:$0xff] %v1058_v55 }
 0x9c5   :  { %1492 = shalt.err (!%p1489_p4)
}
 0x9c6   :  { %s1493_s13 = scalar_lea.hbm %s1882_s11, 256 }
 0x9c7   :  { %p1494_p5 = scmp.ne.s32.totalorder %s1882_s11, %s1493_s13  ;;  %p1497_p6 = scmp.lt.u32.totalorder %s1493_s13, %s1882_s11 }
 0x9c9   :  { %p1499_p7 = pnand %p1497_p6, %p1494_p5 }
 0x9cb   :  { %1502 = shalt.err (!%p1499_p7)
}
 0x9cc   :  { %1074 = dma.vmem_to_hbm [thread:$0]  %s1069_s20, 256, %s1882_s11, [#allocation4], %s1519_s7, %s1519_s7, %s1520_s15  }
 0x9cd   :  { %1511 = dma.done.wait [#allocation4], 256  }
 0x9ce   :  { %1512 = vsyncadd [#allocation4], 4294967040 }
 0x9cf   :  { %1078 = vsyncpa [#allocation3], 1 }
 0x9d0   :  { %1079 = vsyncpa [#allocation6], 1 }
 0x9d1   :  { %1080 = vsyncpa [#allocation9], 1 }
 0x9d2   :  { %1081 = vsyncpa [#allocation12], 1 }
 0x9d3   :  { %1082 = vsyncpa [#allocation4], 1 }

</bundles_post_ra>
